<compile_context>
chip_gen: v5e
topology: v5e:2x2
jax: 0.10.0
libtpu: 0.0.40
codegen_flags: <defaults>
</compile_context>

<pallas_src>
import functools

import jax
import jax.numpy as jnp
from jax.experimental import pallas as pl
from jax.experimental.pallas import tpu as pltpu


def _round_up(x, m):
    return (x + m - 1) // m * m


def _decoder_gru_kernel(seq_len, HP, F,
                        x_ref,        # (1, D)        f32
                        wih_ref,      # (D, 3*HP)     bf16  [r | z | n] lane blocks
                        whh_ref,      # (HP, 3*HP)    bf16  [r | z | n] lane blocks
                        bias_ref,     # (3, 3*HP)     f32   rows: gi-bias, bhh_n row, b_out
                        wout_ref,     # (HP, F)       bf16
                        out_ref,      # (seq_len, F)  f32
                        hmat_ref):    # (seq_len, HP) f32 scratch
    bf16 = jnp.bfloat16
    f32 = jnp.float32

    # Time-invariant fused input projection: one bf16 MXU matmul; b_hh for the
    # r/z gates is already folded into bias row 0.
    gi = jnp.dot(x_ref[...].astype(bf16), wih_ref[...],
                 preferred_element_type=f32) + bias_ref[0:1, :]
    gi_rz = gi[:, :2 * HP]
    gi_n = gi[:, 2 * HP:]

    bhh_row = bias_ref[1:2, :]          # (1, 3*HP) = [0 | 0 | b_hh_n]
    whh = whh_ref[...]                  # hoisted once, stays resident in vregs

    def step(t, h):
        # One fused bf16 MXU matmul per step: (1, HP) @ (HP, 3*HP), f32 acc.
        gh = jnp.dot(h.astype(bf16), whh, preferred_element_type=f32) + bhh_row
        # r and z in a single vreg-wide EUP pass; slices are 128-lane aligned.
        rz = jax.nn.sigmoid(gi_rz + gh[:, :2 * HP])
        r = rz[:, :HP]
        z = rz[:, HP:]
        n = jnp.tanh(gi_n + r * gh[:, 2 * HP:])
        h = (1.0 - z) * n + z * h
        hmat_ref[pl.ds(t, 1), :] = h    # per-step row store, off the critical path
        return h

    h0 = jnp.zeros((1, HP), f32)
    if seq_len <= 16:
        h = h0
        for t in range(seq_len):        # short sequence: full unroll (LLO visibility)
            h = step(t, h)
    else:
        _ = jax.lax.fori_loop(0, seq_len, step, h0)   # bounded live ranges

    # Hoisted output projection off the VMEM scratch: one (seq_len, HP) @ (HP, F)
    # matmul plus a single store.
    hmat = hmat_ref[...]
    bout = bias_ref[2:3, 0:F]           # (1, F)
    y = jnp.dot(hmat.astype(bf16), wout_ref[...], preferred_element_type=f32) + bout
    out_ref[...] = y.astype(out_ref.dtype)


def decoder_forward(x, params, seq_len, n_features=1):
    """Pallas implementation of Decoder.forward (GRU branch, batch=1)."""
    w_ih, w_hh, b_ih, b_hh, w_out, b_out = params
    H = w_hh.shape[1]
    F = n_features
    HP = max(128, _round_up(H, 128))    # each gate gets its own 128-lane block
    GW = 3 * HP
    f32, bf16 = jnp.float32, jnp.bfloat16
    assert F <= GW

    def pad_lane(a, width):             # zero-pad last dim up to `width`
        return jnp.pad(a, [(0, 0)] * (a.ndim - 1) + [(0, width - a.shape[-1])])

    def gate(w, g):                     # rows [g*H, (g+1)*H) — PyTorch order [r, z, n]
        return w[g * H:(g + 1) * H]

    # Fused input projection weights: (D, 3*HP), gate g in lanes [g*HP, g*HP+H).
    wih_all = jnp.concatenate(
        [pad_lane(gate(w_ih, g).T.astype(f32), HP) for g in range(3)],
        axis=1).astype(bf16)

    # Fused hidden projection weights: (HP, 3*HP); rows/cols beyond H are zero,
    # so padded lanes of h never leak into the valid gate values.
    def whh_block(g):
        blk = jnp.zeros((HP, HP), f32)
        return blk.at[:H, :H].set(gate(w_hh, g).T.astype(f32))
    whh_all = jnp.concatenate([whh_block(g) for g in range(3)], axis=1).astype(bf16)

    # Bias block (3, 3*HP) f32:
    #   row 0: input-side gate bias, with b_hh folded in for r and z,
    #   row 1: [0 | 0 | b_hh_n]  (added to W_hn.h each step, before r-gating),
    #   row 2: output-layer bias b_out in the first F lanes.
    bi_r = (gate(b_ih, 0) + gate(b_hh, 0)).reshape(1, H).astype(f32)
    bi_z = (gate(b_ih, 1) + gate(b_hh, 1)).reshape(1, H).astype(f32)
    bi_n = gate(b_ih, 2).reshape(1, H).astype(f32)
    row0 = jnp.concatenate(
        [pad_lane(bi_r, HP), pad_lane(bi_z, HP), pad_lane(bi_n, HP)], axis=1)
    row1 = jnp.concatenate(
        [jnp.zeros((1, 2 * HP), f32),
         pad_lane(gate(b_hh, 2).reshape(1, H).astype(f32), HP)], axis=1)
    row2 = pad_lane(b_out.reshape(1, F).astype(f32), GW)
    bias_all = jnp.concatenate([row0, row1, row2], axis=0)

    # Output projection, padded to (HP, F); rows H:HP are zero.
    wout_t = jnp.pad(w_out.T.astype(f32), ((0, HP - H), (0, 0))).astype(bf16)

    kernel = functools.partial(_decoder_gru_kernel, seq_len, HP, F)
    vmem = pl.BlockSpec(memory_space=pltpu.MemorySpace.VMEM)

    return pl.pallas_call(
        kernel,
        out_shape=jax.ShapeDtypeStruct((seq_len, F), jnp.float32),
        in_specs=[vmem] * 5,
        out_specs=vmem,
        scratch_shapes=[pltpu.VMEM((seq_len, HP), jnp.float32)],
    )(
        x.reshape(1, -1).astype(f32),   # (1, D)
        wih_all, whh_all, bias_all, wout_t,
    )


def decoder_reference(x, params, seq_len, n_features=1):
    """Pure-JAX f32 reference mirroring the PyTorch forward (GRU, batch=1)."""
    w_ih, w_hh, b_ih, b_hh, w_out, b_out = params
    H = w_hh.shape[1]
    xt = x.reshape(1, -1).astype(jnp.float32)
    gi = xt @ w_ih.T + b_ih                                  # time-invariant input proj
    h = jnp.zeros((1, H), jnp.float32)
    outs = []
    for _ in range(seq_len):
        gh = h @ w_hh.T + b_hh
        i_r, i_z, i_n = gi[:, 0:H], gi[:, H:2 * H], gi[:, 2 * H:3 * H]
        h_r, h_z, h_n = gh[:, 0:H], gh[:, H:2 * H], gh[:, 2 * H:3 * H]
        r = jax.nn.sigmoid(i_r + h_r)
        z = jax.nn.sigmoid(i_z + h_z)
        n = jnp.tanh(i_n + r * h_n)
        h = (1.0 - z) * n + z * h
        outs.append(h)
    hs = jnp.concatenate(outs, axis=0)                       # (seq_len, H)
    return hs @ w_out.T + b_out                              # (seq_len, n_features)


def init_decoder_params(key, input_dim, n_features=1):
    """Deterministic synthetic init (PyTorch-like uniform(-1/sqrt(H), 1/sqrt(H)))."""
    hidden_dim = 2 * input_dim
    k = 1.0 / jnp.sqrt(jnp.float32(hidden_dim))
    ks = jax.random.split(key, 6)
    u = lambda kk, shape: jax.random.uniform(kk, shape, jnp.float32, -k, k)
    w_ih = u(ks[0], (3 * hidden_dim, input_dim))
    w_hh = u(ks[1], (3 * hidden_dim, hidden_dim))
    b_ih = u(ks[2], (3 * hidden_dim,))
    b_hh = u(ks[3], (3 * hidden_dim,))
    w_out = u(ks[4], (n_features, hidden_dim))
    b_out = u(ks[5], (n_features,))
    return (w_ih, w_hh, b_ih, b_hh, w_out, b_out)


if __name__ == "__main__":
    seq_len = 8
    input_dim = 32          # -> hidden_dim = 64
    n_features = 1

    key = jax.random.PRNGKey(0)
    k_param, k_x = jax.random.split(key)
    params = init_decoder_params(k_param, input_dim, n_features)
    x = jax.random.normal(k_x, (1, input_dim), jnp.float32)   # latent code

    out = jax.block_until_ready(decoder_forward(x, params, seq_len, n_features))
    ref = decoder_reference(x, params, seq_len, n_features)

    assert out.shape == (seq_len, n_features), out.shape
    # bf16 MXU operands -> looser tolerance than the f32 reference.
    if not jnp.allclose(out, ref, atol=2e-2, rtol=2e-2):
        raise AssertionError(f"mismatch: max err={jnp.max(jnp.abs(out - ref))}")

    print("KERNEL_OK")
</pallas_src>

<mosaic_0001>
module attributes {stable_mosaic.version = 11 : i64} {
  func.func @_decoder_gru_kernel(%arg0: memref<1x32xf32, #tpu.memory_space<vmem>>, %arg1: memref<32x384xbf16, #tpu.memory_space<vmem>>, %arg2: memref<128x384xbf16, #tpu.memory_space<vmem>>, %arg3: memref<3x384xf32, #tpu.memory_space<vmem>>, %arg4: memref<128x1xbf16, #tpu.memory_space<vmem>>, %arg5: memref<8x1xf32, #tpu.memory_space<vmem>>, %arg6: memref<8x128xf32, #tpu.memory_space<vmem>>) attributes {dimension_semantics = [], scalar_prefetch = 0 : i64, scratch_operands = 1 : i64, tpu.core_type = #tpu.core_type<tc>} {
    %c0 = arith.constant 0 : index
    %c0_0 = arith.constant 0 : index
    %0 = vector.load %arg0[%c0, %c0_0] : memref<1x32xf32, #tpu.memory_space<vmem>>, vector<1x32xf32>
    %1 = arith.truncf %0 : vector<1x32xf32> to vector<1x32xbf16>
    %c0_1 = arith.constant 0 : index
    %c0_2 = arith.constant 0 : index
    %2 = vector.load %arg1[%c0_1, %c0_2] : memref<32x384xbf16, #tpu.memory_space<vmem>>, vector<32x384xbf16>
    %cst = arith.constant dense<0.000000e+00> : vector<1x384xf32>
    %3 = tpu.matmul %1, %2, %cst {dimension_numbers = #tpu.dot_dimension_numbers<[1], [0], [0], [1], [0, 0, 1, 1], [], []>} : vector<1x32xbf16>, vector<32x384xbf16>, vector<1x384xf32> -> vector<1x384xf32>
    %c0_3 = arith.constant 0 : index
    %c0_4 = arith.constant 0 : index
    %4 = vector.load %arg3[%c0_3, %c0_4] : memref<3x384xf32, #tpu.memory_space<vmem>>, vector<1x384xf32>
    %5 = arith.addf %3, %4 : vector<1x384xf32>
    %6 = vector.extract_strided_slice %5 {offsets = [0, 0], sizes = [1, 256], strides = [1, 1]} : vector<1x384xf32> to vector<1x256xf32>
    %7 = vector.extract_strided_slice %5 {offsets = [0, 256], sizes = [1, 128], strides = [1, 1]} : vector<1x384xf32> to vector<1x128xf32>
    %c1 = arith.constant 1 : index
    %c0_5 = arith.constant 0 : index
    %8 = vector.load %arg3[%c1, %c0_5] : memref<3x384xf32, #tpu.memory_space<vmem>>, vector<1x384xf32>
    %c0_6 = arith.constant 0 : index
    %c0_7 = arith.constant 0 : index
    %9 = vector.load %arg2[%c0_6, %c0_7] : memref<128x384xbf16, #tpu.memory_space<vmem>>, vector<128x384xbf16>
    %cst_8 = arith.constant 0.000000e+00 : f32
    %10 = vector.broadcast %cst_8 : f32 to vector<1x128xf32>
    %11 = arith.truncf %10 : vector<1x128xf32> to vector<1x128xbf16>
    %cst_9 = arith.constant dense<0.000000e+00> : vector<1x384xf32>
    %12 = tpu.matmul %11, %9, %cst_9 {dimension_numbers = #tpu.dot_dimension_numbers<[1], [0], [0], [1], [0, 0, 1, 1], [], []>} : vector<1x128xbf16>, vector<128x384xbf16>, vector<1x384xf32> -> vector<1x384xf32>
    %13 = arith.addf %12, %8 : vector<1x384xf32>
    %14 = vector.extract_strided_slice %13 {offsets = [0, 0], sizes = [1, 256], strides = [1, 1]} : vector<1x384xf32> to vector<1x256xf32>
    %15 = arith.addf %6, %14 : vector<1x256xf32>
    %16 = arith.negf %15 : vector<1x256xf32>
    %17 = math.exp %16 : vector<1x256xf32>
    %cst_10 = arith.constant 1.000000e+00 : f32
    %18 = vector.broadcast %cst_10 : f32 to vector<1x256xf32>
    %19 = arith.addf %18, %17 : vector<1x256xf32>
    %20 = arith.divf %18, %19 : vector<1x256xf32>
    %21 = vector.extract_strided_slice %20 {offsets = [0, 0], sizes = [1, 128], strides = [1, 1]} : vector<1x256xf32> to vector<1x128xf32>
    %22 = vector.extract_strided_slice %20 {offsets = [0, 128], sizes = [1, 128], strides = [1, 1]} : vector<1x256xf32> to vector<1x128xf32>
    %23 = vector.extract_strided_slice %13 {offsets = [0, 256], sizes = [1, 128], strides = [1, 1]} : vector<1x384xf32> to vector<1x128xf32>
    %24 = arith.mulf %21, %23 : vector<1x128xf32>
    %25 = arith.addf %7, %24 : vector<1x128xf32>
    %26 = math.tanh %25 : vector<1x128xf32>
    %cst_11 = arith.constant 1.000000e+00 : f32
    %27 = vector.broadcast %cst_11 : f32 to vector<1x128xf32>
    %28 = arith.subf %27, %22 : vector<1x128xf32>
    %29 = arith.mulf %28, %26 : vector<1x128xf32>
    %30 = arith.mulf %22, %10 : vector<1x128xf32>
    %31 = arith.addf %29, %30 : vector<1x128xf32>
    %c0_12 = arith.constant 0 : index
    %c0_13 = arith.constant 0 : index
    %32 = vector.load %arg6[%c0_12, %c0_13] : memref<8x128xf32, #tpu.memory_space<vmem>>, vector<1x128xf32>
    tpu.vector_store %arg6[%c0_12, %c0_13], %31 {strides = array<i32>} : memref<8x128xf32, #tpu.memory_space<vmem>>, vector<1x128xf32>,
    %33 = arith.truncf %31 : vector<1x128xf32> to vector<1x128xbf16>
    %cst_14 = arith.constant dense<0.000000e+00> : vector<1x384xf32>
    %34 = tpu.matmul %33, %9, %cst_14 {dimension_numbers = #tpu.dot_dimension_numbers<[1], [0], [0], [1], [0, 0, 1, 1], [], []>} : vector<1x128xbf16>, vector<128x384xbf16>, vector<1x384xf32> -> vector<1x384xf32>
    %35 = arith.addf %34, %8 : vector<1x384xf32>
    %36 = vector.extract_strided_slice %35 {offsets = [0, 0], sizes = [1, 256], strides = [1, 1]} : vector<1x384xf32> to vector<1x256xf32>
    %37 = arith.addf %6, %36 : vector<1x256xf32>
    %38 = arith.negf %37 : vector<1x256xf32>
    %39 = math.exp %38 : vector<1x256xf32>
    %cst_15 = arith.constant 1.000000e+00 : f32
    %40 = vector.broadcast %cst_15 : f32 to vector<1x256xf32>
    %41 = arith.addf %40, %39 : vector<1x256xf32>
    %42 = arith.divf %40, %41 : vector<1x256xf32>
    %43 = vector.extract_strided_slice %42 {offsets = [0, 0], sizes = [1, 128], strides = [1, 1]} : vector<1x256xf32> to vector<1x128xf32>
    %44 = vector.extract_strided_slice %42 {offsets = [0, 128], sizes = [1, 128], strides = [1, 1]} : vector<1x256xf32> to vector<1x128xf32>
    %45 = vector.extract_strided_slice %35 {offsets = [0, 256], sizes = [1, 128], strides = [1, 1]} : vector<1x384xf32> to vector<1x128xf32>
    %46 = arith.mulf %43, %45 : vector<1x128xf32>
    %47 = arith.addf %7, %46 : vector<1x128xf32>
    %48 = math.tanh %47 : vector<1x128xf32>
    %cst_16 = arith.constant 1.000000e+00 : f32
    %49 = vector.broadcast %cst_16 : f32 to vector<1x128xf32>
    %50 = arith.subf %49, %44 : vector<1x128xf32>
    %51 = arith.mulf %50, %48 : vector<1x128xf32>
    %52 = arith.mulf %44, %31 : vector<1x128xf32>
    %53 = arith.addf %51, %52 : vector<1x128xf32>
    %c1_17 = arith.constant 1 : index
    %c0_18 = arith.constant 0 : index
    %54 = vector.load %arg6[%c1_17, %c0_18] : memref<8x128xf32, #tpu.memory_space<vmem>>, vector<1x128xf32>
    tpu.vector_store %arg6[%c1_17, %c0_18], %53 {strides = array<i32>} : memref<8x128xf32, #tpu.memory_space<vmem>>, vector<1x128xf32>,
    %55 = arith.truncf %53 : vector<1x128xf32> to vector<1x128xbf16>
    %cst_19 = arith.constant dense<0.000000e+00> : vector<1x384xf32>
    %56 = tpu.matmul %55, %9, %cst_19 {dimension_numbers = #tpu.dot_dimension_numbers<[1], [0], [0], [1], [0, 0, 1, 1], [], []>} : vector<1x128xbf16>, vector<128x384xbf16>, vector<1x384xf32> -> vector<1x384xf32>
    %57 = arith.addf %56, %8 : vector<1x384xf32>
    %58 = vector.extract_strided_slice %57 {offsets = [0, 0], sizes = [1, 256], strides = [1, 1]} : vector<1x384xf32> to vector<1x256xf32>
    %59 = arith.addf %6, %58 : vector<1x256xf32>
    %60 = arith.negf %59 : vector<1x256xf32>
    %61 = math.exp %60 : vector<1x256xf32>
    %cst_20 = arith.constant 1.000000e+00 : f32
    %62 = vector.broadcast %cst_20 : f32 to vector<1x256xf32>
    %63 = arith.addf %62, %61 : vector<1x256xf32>
    %64 = arith.divf %62, %63 : vector<1x256xf32>
    %65 = vector.extract_strided_slice %64 {offsets = [0, 0], sizes = [1, 128], strides = [1, 1]} : vector<1x256xf32> to vector<1x128xf32>
    %66 = vector.extract_strided_slice %64 {offsets = [0, 128], sizes = [1, 128], strides = [1, 1]} : vector<1x256xf32> to vector<1x128xf32>
    %67 = vector.extract_strided_slice %57 {offsets = [0, 256], sizes = [1, 128], strides = [1, 1]} : vector<1x384xf32> to vector<1x128xf32>
    %68 = arith.mulf %65, %67 : vector<1x128xf32>
    %69 = arith.addf %7, %68 : vector<1x128xf32>
    %70 = math.tanh %69 : vector<1x128xf32>
    %cst_21 = arith.constant 1.000000e+00 : f32
    %71 = vector.broadcast %cst_21 : f32 to vector<1x128xf32>
    %72 = arith.subf %71, %66 : vector<1x128xf32>
    %73 = arith.mulf %72, %70 : vector<1x128xf32>
    %74 = arith.mulf %66, %53 : vector<1x128xf32>
    %75 = arith.addf %73, %74 : vector<1x128xf32>
    %c2 = arith.constant 2 : index
    %c0_22 = arith.constant 0 : index
    %76 = vector.load %arg6[%c2, %c0_22] : memref<8x128xf32, #tpu.memory_space<vmem>>, vector<1x128xf32>
    tpu.vector_store %arg6[%c2, %c0_22], %75 {strides = array<i32>} : memref<8x128xf32, #tpu.memory_space<vmem>>, vector<1x128xf32>,
    %77 = arith.truncf %75 : vector<1x128xf32> to vector<1x128xbf16>
    %cst_23 = arith.constant dense<0.000000e+00> : vector<1x384xf32>
    %78 = tpu.matmul %77, %9, %cst_23 {dimension_numbers = #tpu.dot_dimension_numbers<[1], [0], [0], [1], [0, 0, 1, 1], [], []>} : vector<1x128xbf16>, vector<128x384xbf16>, vector<1x384xf32> -> vector<1x384xf32>
    %79 = arith.addf %78, %8 : vector<1x384xf32>
    %80 = vector.extract_strided_slice %79 {offsets = [0, 0], sizes = [1, 256], strides = [1, 1]} : vector<1x384xf32> to vector<1x256xf32>
    %81 = arith.addf %6, %80 : vector<1x256xf32>
    %82 = arith.negf %81 : vector<1x256xf32>
    %83 = math.exp %82 : vector<1x256xf32>
    %cst_24 = arith.constant 1.000000e+00 : f32
    %84 = vector.broadcast %cst_24 : f32 to vector<1x256xf32>
    %85 = arith.addf %84, %83 : vector<1x256xf32>
    %86 = arith.divf %84, %85 : vector<1x256xf32>
    %87 = vector.extract_strided_slice %86 {offsets = [0, 0], sizes = [1, 128], strides = [1, 1]} : vector<1x256xf32> to vector<1x128xf32>
    %88 = vector.extract_strided_slice %86 {offsets = [0, 128], sizes = [1, 128], strides = [1, 1]} : vector<1x256xf32> to vector<1x128xf32>
    %89 = vector.extract_strided_slice %79 {offsets = [0, 256], sizes = [1, 128], strides = [1, 1]} : vector<1x384xf32> to vector<1x128xf32>
    %90 = arith.mulf %87, %89 : vector<1x128xf32>
    %91 = arith.addf %7, %90 : vector<1x128xf32>
    %92 = math.tanh %91 : vector<1x128xf32>
    %cst_25 = arith.constant 1.000000e+00 : f32
    %93 = vector.broadcast %cst_25 : f32 to vector<1x128xf32>
    %94 = arith.subf %93, %88 : vector<1x128xf32>
    %95 = arith.mulf %94, %92 : vector<1x128xf32>
    %96 = arith.mulf %88, %75 : vector<1x128xf32>
    %97 = arith.addf %95, %96 : vector<1x128xf32>
    %c3 = arith.constant 3 : index
    %c0_26 = arith.constant 0 : index
    %98 = vector.load %arg6[%c3, %c0_26] : memref<8x128xf32, #tpu.memory_space<vmem>>, vector<1x128xf32>
    tpu.vector_store %arg6[%c3, %c0_26], %97 {strides = array<i32>} : memref<8x128xf32, #tpu.memory_space<vmem>>, vector<1x128xf32>,
    %99 = arith.truncf %97 : vector<1x128xf32> to vector<1x128xbf16>
    %cst_27 = arith.constant dense<0.000000e+00> : vector<1x384xf32>
    %100 = tpu.matmul %99, %9, %cst_27 {dimension_numbers = #tpu.dot_dimension_numbers<[1], [0], [0], [1], [0, 0, 1, 1], [], []>} : vector<1x128xbf16>, vector<128x384xbf16>, vector<1x384xf32> -> vector<1x384xf32>
    %101 = arith.addf %100, %8 : vector<1x384xf32>
    %102 = vector.extract_strided_slice %101 {offsets = [0, 0], sizes = [1, 256], strides = [1, 1]} : vector<1x384xf32> to vector<1x256xf32>
    %103 = arith.addf %6, %102 : vector<1x256xf32>
    %104 = arith.negf %103 : vector<1x256xf32>
    %105 = math.exp %104 : vector<1x256xf32>
    %cst_28 = arith.constant 1.000000e+00 : f32
    %106 = vector.broadcast %cst_28 : f32 to vector<1x256xf32>
    %107 = arith.addf %106, %105 : vector<1x256xf32>
    %108 = arith.divf %106, %107 : vector<1x256xf32>
    %109 = vector.extract_strided_slice %108 {offsets = [0, 0], sizes = [1, 128], strides = [1, 1]} : vector<1x256xf32> to vector<1x128xf32>
    %110 = vector.extract_strided_slice %108 {offsets = [0, 128], sizes = [1, 128], strides = [1, 1]} : vector<1x256xf32> to vector<1x128xf32>
    %111 = vector.extract_strided_slice %101 {offsets = [0, 256], sizes = [1, 128], strides = [1, 1]} : vector<1x384xf32> to vector<1x128xf32>
    %112 = arith.mulf %109, %111 : vector<1x128xf32>
    %113 = arith.addf %7, %112 : vector<1x128xf32>
    %114 = math.tanh %113 : vector<1x128xf32>
    %cst_29 = arith.constant 1.000000e+00 : f32
    %115 = vector.broadcast %cst_29 : f32 to vector<1x128xf32>
    %116 = arith.subf %115, %110 : vector<1x128xf32>
    %117 = arith.mulf %116, %114 : vector<1x128xf32>
    %118 = arith.mulf %110, %97 : vector<1x128xf32>
    %119 = arith.addf %117, %118 : vector<1x128xf32>
    %c4 = arith.constant 4 : index
    %c0_30 = arith.constant 0 : index
    %120 = vector.load %arg6[%c4, %c0_30] : memref<8x128xf32, #tpu.memory_space<vmem>>, vector<1x128xf32>
    tpu.vector_store %arg6[%c4, %c0_30], %119 {strides = array<i32>} : memref<8x128xf32, #tpu.memory_space<vmem>>, vector<1x128xf32>,
    %121 = arith.truncf %119 : vector<1x128xf32> to vector<1x128xbf16>
    %cst_31 = arith.constant dense<0.000000e+00> : vector<1x384xf32>
    %122 = tpu.matmul %121, %9, %cst_31 {dimension_numbers = #tpu.dot_dimension_numbers<[1], [0], [0], [1], [0, 0, 1, 1], [], []>} : vector<1x128xbf16>, vector<128x384xbf16>, vector<1x384xf32> -> vector<1x384xf32>
    %123 = arith.addf %122, %8 : vector<1x384xf32>
    %124 = vector.extract_strided_slice %123 {offsets = [0, 0], sizes = [1, 256], strides = [1, 1]} : vector<1x384xf32> to vector<1x256xf32>
    %125 = arith.addf %6, %124 : vector<1x256xf32>
    %126 = arith.negf %125 : vector<1x256xf32>
    %127 = math.exp %126 : vector<1x256xf32>
    %cst_32 = arith.constant 1.000000e+00 : f32
    %128 = vector.broadcast %cst_32 : f32 to vector<1x256xf32>
    %129 = arith.addf %128, %127 : vector<1x256xf32>
    %130 = arith.divf %128, %129 : vector<1x256xf32>
    %131 = vector.extract_strided_slice %130 {offsets = [0, 0], sizes = [1, 128], strides = [1, 1]} : vector<1x256xf32> to vector<1x128xf32>
    %132 = vector.extract_strided_slice %130 {offsets = [0, 128], sizes = [1, 128], strides = [1, 1]} : vector<1x256xf32> to vector<1x128xf32>
    %133 = vector.extract_strided_slice %123 {offsets = [0, 256], sizes = [1, 128], strides = [1, 1]} : vector<1x384xf32> to vector<1x128xf32>
    %134 = arith.mulf %131, %133 : vector<1x128xf32>
    %135 = arith.addf %7, %134 : vector<1x128xf32>
    %136 = math.tanh %135 : vector<1x128xf32>
    %cst_33 = arith.constant 1.000000e+00 : f32
    %137 = vector.broadcast %cst_33 : f32 to vector<1x128xf32>
    %138 = arith.subf %137, %132 : vector<1x128xf32>
    %139 = arith.mulf %138, %136 : vector<1x128xf32>
    %140 = arith.mulf %132, %119 : vector<1x128xf32>
    %141 = arith.addf %139, %140 : vector<1x128xf32>
    %c5 = arith.constant 5 : index
    %c0_34 = arith.constant 0 : index
    %142 = vector.load %arg6[%c5, %c0_34] : memref<8x128xf32, #tpu.memory_space<vmem>>, vector<1x128xf32>
    tpu.vector_store %arg6[%c5, %c0_34], %141 {strides = array<i32>} : memref<8x128xf32, #tpu.memory_space<vmem>>, vector<1x128xf32>,
    %143 = arith.truncf %141 : vector<1x128xf32> to vector<1x128xbf16>
    %cst_35 = arith.constant dense<0.000000e+00> : vector<1x384xf32>
    %144 = tpu.matmul %143, %9, %cst_35 {dimension_numbers = #tpu.dot_dimension_numbers<[1], [0], [0], [1], [0, 0, 1, 1], [], []>} : vector<1x128xbf16>, vector<128x384xbf16>, vector<1x384xf32> -> vector<1x384xf32>
    %145 = arith.addf %144, %8 : vector<1x384xf32>
    %146 = vector.extract_strided_slice %145 {offsets = [0, 0], sizes = [1, 256], strides = [1, 1]} : vector<1x384xf32> to vector<1x256xf32>
    %147 = arith.addf %6, %146 : vector<1x256xf32>
    %148 = arith.negf %147 : vector<1x256xf32>
    %149 = math.exp %148 : vector<1x256xf32>
    %cst_36 = arith.constant 1.000000e+00 : f32
    %150 = vector.broadcast %cst_36 : f32 to vector<1x256xf32>
    %151 = arith.addf %150, %149 : vector<1x256xf32>
    %152 = arith.divf %150, %151 : vector<1x256xf32>
    %153 = vector.extract_strided_slice %152 {offsets = [0, 0], sizes = [1, 128], strides = [1, 1]} : vector<1x256xf32> to vector<1x128xf32>
    %154 = vector.extract_strided_slice %152 {offsets = [0, 128], sizes = [1, 128], strides = [1, 1]} : vector<1x256xf32> to vector<1x128xf32>
    %155 = vector.extract_strided_slice %145 {offsets = [0, 256], sizes = [1, 128], strides = [1, 1]} : vector<1x384xf32> to vector<1x128xf32>
    %156 = arith.mulf %153, %155 : vector<1x128xf32>
    %157 = arith.addf %7, %156 : vector<1x128xf32>
    %158 = math.tanh %157 : vector<1x128xf32>
    %cst_37 = arith.constant 1.000000e+00 : f32
    %159 = vector.broadcast %cst_37 : f32 to vector<1x128xf32>
    %160 = arith.subf %159, %154 : vector<1x128xf32>
    %161 = arith.mulf %160, %158 : vector<1x128xf32>
    %162 = arith.mulf %154, %141 : vector<1x128xf32>
    %163 = arith.addf %161, %162 : vector<1x128xf32>
    %c6 = arith.constant 6 : index
    %c0_38 = arith.constant 0 : index
    %164 = vector.load %arg6[%c6, %c0_38] : memref<8x128xf32, #tpu.memory_space<vmem>>, vector<1x128xf32>
    tpu.vector_store %arg6[%c6, %c0_38], %163 {strides = array<i32>} : memref<8x128xf32, #tpu.memory_space<vmem>>, vector<1x128xf32>,
    %165 = arith.truncf %163 : vector<1x128xf32> to vector<1x128xbf16>
    %cst_39 = arith.constant dense<0.000000e+00> : vector<1x384xf32>
    %166 = tpu.matmul %165, %9, %cst_39 {dimension_numbers = #tpu.dot_dimension_numbers<[1], [0], [0], [1], [0, 0, 1, 1], [], []>} : vector<1x128xbf16>, vector<128x384xbf16>, vector<1x384xf32> -> vector<1x384xf32>
    %167 = arith.addf %166, %8 : vector<1x384xf32>
    %168 = vector.extract_strided_slice %167 {offsets = [0, 0], sizes = [1, 256], strides = [1, 1]} : vector<1x384xf32> to vector<1x256xf32>
    %169 = arith.addf %6, %168 : vector<1x256xf32>
    %170 = arith.negf %169 : vector<1x256xf32>
    %171 = math.exp %170 : vector<1x256xf32>
    %cst_40 = arith.constant 1.000000e+00 : f32
    %172 = vector.broadcast %cst_40 : f32 to vector<1x256xf32>
    %173 = arith.addf %172, %171 : vector<1x256xf32>
    %174 = arith.divf %172, %173 : vector<1x256xf32>
    %175 = vector.extract_strided_slice %174 {offsets = [0, 0], sizes = [1, 128], strides = [1, 1]} : vector<1x256xf32> to vector<1x128xf32>
    %176 = vector.extract_strided_slice %174 {offsets = [0, 128], sizes = [1, 128], strides = [1, 1]} : vector<1x256xf32> to vector<1x128xf32>
    %177 = vector.extract_strided_slice %167 {offsets = [0, 256], sizes = [1, 128], strides = [1, 1]} : vector<1x384xf32> to vector<1x128xf32>
    %178 = arith.mulf %175, %177 : vector<1x128xf32>
    %179 = arith.addf %7, %178 : vector<1x128xf32>
    %180 = math.tanh %179 : vector<1x128xf32>
    %cst_41 = arith.constant 1.000000e+00 : f32
    %181 = vector.broadcast %cst_41 : f32 to vector<1x128xf32>
    %182 = arith.subf %181, %176 : vector<1x128xf32>
    %183 = arith.mulf %182, %180 : vector<1x128xf32>
    %184 = arith.mulf %176, %163 : vector<1x128xf32>
    %185 = arith.addf %183, %184 : vector<1x128xf32>
    %c7 = arith.constant 7 : index
    %c0_42 = arith.constant 0 : index
    %186 = vector.load %arg6[%c7, %c0_42] : memref<8x128xf32, #tpu.memory_space<vmem>>, vector<1x128xf32>
    tpu.vector_store %arg6[%c7, %c0_42], %185 {strides = array<i32>} : memref<8x128xf32, #tpu.memory_space<vmem>>, vector<1x128xf32>,
    %c0_43 = arith.constant 0 : index
    %c0_44 = arith.constant 0 : index
    %187 = vector.load %arg6[%c0_43, %c0_44] : memref<8x128xf32, #tpu.memory_space<vmem>>, vector<8x128xf32>
    %c2_45 = arith.constant 2 : index
    %c0_46 = arith.constant 0 : index
    %188 = vector.load %arg3[%c2_45, %c0_46] : memref<3x384xf32, #tpu.memory_space<vmem>>, vector<1x1xf32>
    %189 = arith.truncf %187 : vector<8x128xf32> to vector<8x128xbf16>
    %c0_47 = arith.constant 0 : index
    %c0_48 = arith.constant 0 : index
    %190 = vector.load %arg4[%c0_47, %c0_48] : memref<128x1xbf16, #tpu.memory_space<vmem>>, vector<128x1xbf16>
    %cst_49 = arith.constant dense<0.000000e+00> : vector<8x1xf32>
    %191 = tpu.matmul %189, %190, %cst_49 {dimension_numbers = #tpu.dot_dimension_numbers<[1], [0], [0], [1], [0, 0, 1, 1], [], []>} : vector<8x128xbf16>, vector<128x1xbf16>, vector<8x1xf32> -> vector<8x1xf32>
    %192 = vector.broadcast %188 : vector<1x1xf32> to vector<8x1xf32>
    %193 = arith.addf %191, %192 : vector<8x1xf32>
    %c0_50 = arith.constant 0 : index
    %c0_51 = arith.constant 0 : index
    %194 = vector.load %arg5[%c0_50, %c0_51] : memref<8x1xf32, #tpu.memory_space<vmem>>, vector<8x1xf32>
    tpu.vector_store %arg5[%c0_50, %c0_51], %193 {strides = array<i32>} : memref<8x1xf32, #tpu.memory_space<vmem>>, vector<8x1xf32>,
    return
  }
}

</mosaic_0001>

<bundles_post_ra>
// kernel: tpu_custom_call.1
= control target key start
LH: loop header
LB: loop body
LE: loop exit
PB: predicated region body
PF: predicated region fallthrough
CT: control target
= control target key end

     0   :  { %10 = vsyncpa [#allocation4], 0  ;;  %s1411_s21 = smov [#allocation3]   ;;  %s1412_s23 = smov 192   ;;  %s1867_s0 = inlined_call_operand.vmem [shape: f32[1,32], index: 0, kind: input, shape index: {}]   ;;  %s1868_s1 = inlined_call_operand.vmem [shape: bf16[32,384], index: 1, kind: input, shape index: {}]   ;;  %s1869_s2 = inlined_call_operand.hbm [shape: bf16[128,384], index: 2, kind: input, shape index: {}]   ;;  %s1870_s3 = inlined_call_operand.vmem [shape: f32[3,384], index: 3, kind: input, shape index: {}]   ;;  %s1871_s4 = inlined_call_operand.vmem [shape: bf16[128,1], index: 4, kind: input, shape index: {}]   ;;  %s1872_s5 = inlined_call_operand.vmem [shape: f32[8,1], index: 5, kind: output, shape index: {}]  }
   0x1   :  { %s19_s20 = sshll.u32 %s1869_s2, 4  ;;  %s21_s22 = sshll.u32 %s1411_s21, 4  ;;  %s20_s20 = int_to_ptr.hbm [resolvable:$true] %s19_s20  ;;  %s22_s22 = int_to_ptr.vmem [resolvable:$true] %s21_s22 }
   0x2   :  { %s1413_s24 = smov 12  }
   0x3   :  { %27 = dma.hbm_to_vmem [thread:$0]  %s20_s20, 3072, %s22_s22, [#allocation4], %s1412_s23, %s1412_s23, %s1413_s24  }
   0x4   :  { %1409 = dma.done.wait [#allocation4], 3072  }
   0x5   :  { %1410 = vsyncadd [#allocation4], 4294964224  ;;  %v1104_v0 = vld [vmem:[%s1868_s1 + $0x18] sm:$0xf]  ;;  %v1266_v1 = vld [vmem:[%s1868_s1 + $0x20] sm:$0xf0] }
   0x6   :  { %v1204_v2 = vld [vmem:[#allocation3 + $0xa8] sm:$0xf]  ;;  %v1105_v3 = vor.u32 %v1266_v1, %v1104_v0  ;;  %v1290_v4 = vld [vmem:[#allocation3 + $0xb0] sm:$0xf0]  ;;  %v1092_v5 = vld [vmem:[%s1868_s1] sm:$0xf] }
   0x7   :  { %v1263_v6 = vld [vmem:[%s1868_s1 + $0x8] sm:$0xf0]  ;;  %v1460_v7 = vor.u32 %v1290_v4, %v1204_v2  ;;  %v1192_v8 = vld [vmem:[#allocation3 + $0x90] sm:$0xf]  ;;  %v1287_v9 = vld [vmem:[#allocation3 + $0x98] sm:$0xf0] }
   0x8   :  { %v1289_v10 = vld [vmem:[#allocation3 + $0xac] sm:$0xf]  ;;  %97 = vmatpush.bf16.msra.mxu0 %v1105_v3  ;;  %v1093_v11 = vor.u32 %v1263_v6, %v1092_v5  ;;  %v1206_v12 = vld [vmem:[#allocation3 + $0xb4] sm:$0xf0]  ;;  %v1463_v13 = vor.u32 %v1287_v9, %v1192_v8  ;;  %v1284_v16 = vld [vmem:[#allocation3 + $0x80] sm:$0xf0] }
   0x9   :  { %299 = vmatpush.bf16.msra.mxu3 %v1460_v7  ;;  %v1465_v14 = vor.u32 %v1289_v10, %v1206_v12  ;;  %v1180_v15 = vld [vmem:[#allocation3 + $0x78] sm:$0xf]  ;;  %v1286_v17 = vld [vmem:[#allocation3 + $0x94] sm:$0xf]  ;;  %v1194_v18 = vld [vmem:[#allocation3 + $0x9c] sm:$0xf0] }
   0xa   :  { %v37_v19 = vld [vmem:[%s1867_s0] sm:$0x1]  ;;  %vm87_vm0 = vcmask 261120   ;;  %v1472_v20 = vor.u32 %v1284_v16, %v1180_v15  ;;  %v1474_v21 = vor.u32 %v1286_v17, %v1194_v18  ;;  %v1168_v22 = vld [vmem:[#allocation3 + $0x60] sm:$0xf] }
   0xb   :  { %v1281_v23 = vld [vmem:[#allocation3 + $0x68] sm:$0xf0]  ;;  %v1283_v24 = vld [vmem:[#allocation3 + $0x7c] sm:$0xf]  ;;  %v1476_v25 = vpack.c.bf16 %v37_v19, %v37_v19  ;;  %v1182_v26 = vld [vmem:[#allocation3 + $0x84] sm:$0xf0] }
   0xc   :  { %98 = vmatpush.bf16.msra.mxu0 %v1093_v11  ;;  %v1265_v27 = vld [vmem:[%s1868_s1 + $0x1c] sm:$0xf]  ;;  %v1106_v28 = vld [vmem:[%s1868_s1 + $0x24] sm:$0xf0]  ;;  %v1262_v30 = vld [vmem:[%s1868_s1 + $0x4] sm:$0xf]  ;;  %v1494_v32 = vor.u32 %v1281_v23, %v1168_v22  ;;  %v1496_v33 = vor.u32 %v1283_v24, %v1182_v26 }
   0xd   :  { %300 = vmatpush.bf16.msra.mxu3 %v1463_v13  ;;  %v1109_v29 = vor.u32 %v1265_v27, %v1106_v28  ;;  %v1094_v31 = vld [vmem:[%s1868_s1 + $0xc] sm:$0xf0]  ;;  %v1212_v35 = vld [vmem:[#allocation3 + $0xb0] sm:$0xf]  ;;  %v1291_v36 = vld [vmem:[#allocation3 + $0xb8] sm:$0xf0] }
   0xe   :  { %v1156_v34 = vld [vmem:[#allocation3 + $0x48] sm:$0xf]  ;;  %v1278_v37 = vld [vmem:[#allocation3 + $0x50] sm:$0xf0]  ;;  %v1280_v38 = vld [vmem:[#allocation3 + $0x64] sm:$0xf]  ;;  %v1097_v40 = vor.u32 %v1262_v30, %v1094_v31  ;;  %v1498_v41 = vor.u32 %v1291_v36, %v1212_v35 }
   0xf   :  { %1114 = vmatmul.msk.bf16.vlgmr.msra.gmra.mxu0 %vm87_vm0, %v1476_v25  ;;  %v1170_v39 = vld [vmem:[#allocation3 + $0x6c] sm:$0xf0]  ;;  %110 = vmatpush.bf16.msra.mxu1 %v1109_v29  ;;  %v1200_v42 = vld [vmem:[#allocation3 + $0x98] sm:$0xf]  ;;  %v1288_v43 = vld [vmem:[#allocation3 + $0xa0] sm:$0xf0]  ;;  %v1502_v44 = vor.u32 %v1278_v37, %v1156_v34 }
  0x10   :  { %312 = vmatpush.bf16.msrb.mxu0 %v1465_v14  ;;  %v1504_v45 = vor.u32 %v1280_v38, %v1170_v39  ;;  %v1144_v46 = vld [vmem:[#allocation3 + $0x30] sm:$0xf]  ;;  %v1275_v47 = vld [vmem:[#allocation3 + $0x38] sm:$0xf0]  ;;  %v1277_v48 = vld [vmem:[#allocation3 + $0x4c] sm:$0xf]  ;;  %v1513_v52 = vor.u32 %v1288_v43, %v1200_v42 }
  0x11   :  { %301 = vmatpush.bf16.msra.mxu3 %v1472_v20  ;;  %v1158_v49 = vld [vmem:[#allocation3 + $0x54] sm:$0xf0]  ;;  %v1267_v51 = vld [vmem:[%s1868_s1 + $0x28] sm:$0xf0]  ;;  %v1100_v54 = vld [vmem:[%s1868_s1 + $0x8] sm:$0xf]  ;;  %v1523_v58 = vor.u32 %v1275_v47, %v1144_v46 }
  0x12   :  { %v1112_v50 = vld [vmem:[%s1868_s1 + $0x20] sm:$0xf]  ;;  %v1188_v55 = vld [vmem:[#allocation3 + $0x80] sm:$0xf]  ;;  %v1285_v56 = vld [vmem:[#allocation3 + $0x88] sm:$0xf0]  ;;  %v1525_v59 = vor.u32 %v1277_v48, %v1158_v49 }
  0x13   :  { %111 = vmatpush.bf16.msra.mxu1 %v1097_v40  ;;  %v1113_v53 = vor.u32 %v1267_v51, %v1112_v50  ;;  %v1264_v57 = vld [vmem:[%s1868_s1 + $0x10] sm:$0xf0]  ;;  %v1132_v60 = vld [vmem:[#allocation3 + $0x18] sm:$0xf]  ;;  %v1272_v61 = vld [vmem:[#allocation3 + $0x20] sm:$0xf0]  ;;  %v1530_v1 = vor.u32 %v1285_v56, %v1188_v55 }
  0x14   :  { %313 = vmatpush.bf16.msrb.mxu0 %v1474_v21  ;;  %v1274_v62 = vld [vmem:[#allocation3 + $0x34] sm:$0xf]  ;;  %v1146_v63 = vld [vmem:[#allocation3 + $0x3c] sm:$0xf0]  ;;  %v1101_v0 = vor.u32 %v1264_v57, %v1100_v54  ;;  %v1176_v2 = vld [vmem:[#allocation3 + $0x68] sm:$0xf]  ;;  %v1534_v4 = vor.u32 %v1272_v61, %v1132_v60 }
  0x15   :  { %302 = vmatpush.bf16.msra.mxu3 %v1494_v32  ;;  %123 = vmatpush.bf16.msra.mxu2 %v1113_v53  ;;  %v1282_v3 = vld [vmem:[#allocation3 + $0x70] sm:$0xf0]  ;;  %v1536_v5 = vor.u32 %v1274_v62, %v1146_v63  ;;  %v1120_v6 = vld [vmem:[#allocation3] sm:$0xf]  ;;  %v1269_v8 = vld [vmem:[#allocation3 + $0x8] sm:$0xf0] }
  0x16   :  { %1115 = vmatmul.msk.bf16.vlgmr.msra.gmra.mxu1 %vm87_vm0, %v1476_v25  ;;  %v1271_v9 = vld [vmem:[#allocation3 + $0x1c] sm:$0xf]  ;;  %v1134_v10 = vld [vmem:[#allocation3 + $0x24] sm:$0xf0]  ;;  %v1539_v11 = vor.u32 %v1282_v3, %v1176_v2  ;;  %v1164_v12 = vld [vmem:[#allocation3 + $0x50] sm:$0xf]  ;;  %v1544_v16 = vor.u32 %v1269_v8, %v1120_v6 }
  0x17   :  { %325 = vmatpush.bf16.msrb.mxu1 %v1498_v41  ;;  %v1279_v15 = vld [vmem:[#allocation3 + $0x58] sm:$0xf0]  ;;  %v1546_v17 = vor.u32 %v1271_v9, %v1134_v10  ;;  %v1268_v18 = vld [vmem:[#allocation3 + $0x4] sm:$0xf]  ;;  %v1122_v19 = vld [vmem:[#allocation3 + $0xc] sm:$0xf0] }
  0x18   :  { %314 = vmatpush.bf16.msrb.mxu0 %v1496_v33  ;;  %v1551_v22 = vor.u32 %v1279_v15, %v1164_v12  ;;  %v1152_v23 = vld [vmem:[#allocation3 + $0x38] sm:$0xf]  ;;  %v1276_v24 = vld [vmem:[#allocation3 + $0x40] sm:$0xf0]  ;;  %v1556_v26 = vor.u32 %v1268_v18, %v1122_v19  ;;  %v1140_v28 = vld [vmem:[#allocation3 + $0x20] sm:$0xf] }
  0x19   :  { %303 = vmatpush.bf16.msra.mxu3 %v1502_v44  ;;  %124 = vmatpush.bf16.msra.mxu2 %v1101_v0  ;;  %v1560_v27 = vor.u32 %v1276_v24, %v1152_v23  ;;  %v1273_v29 = vld [vmem:[#allocation3 + $0x28] sm:$0xf0]  ;;  %v1128_v31 = vld [vmem:[#allocation3 + $0x8] sm:$0xf]  ;;  %v1270_v34 = vld [vmem:[#allocation3 + $0x10] sm:$0xf0] }
  0x1a   :  { %v1567_v30 = vor.u32 %v1273_v29, %v1140_v28  ;;  %v1573_v35 = vor.u32 %v1270_v34, %v1128_v31  ;;  %v47_v40 = vld [vmem:[%s1870_s3] ss:$4 sm:$0x7]  ;;  %v1117_v42 = vld [vmem:[%s1870_s3 + $0x1] ss:$4 sm:$0x7] }
  0x1b   :  { %326 = vmatpush.bf16.msrb.mxu1 %v1513_v52  ;;  %v82_v43 = vperm.slane %v47_v40, 1  ;;  %v1637_v47 = vperm.slane %v1117_v42, 1  ;;  %v81_v48 = vperm.slane %v47_v40, 0  ;;  %v1641_v50 = vperm.slane %v1117_v42, 0 }
  0x1c   :  { %315 = vmatpush.bf16.msrb.mxu0 %v1504_v45  ;;  %1116 = vmatmul.msk.bf16.vlgmr.msra.gmra.mxu2 %vm87_vm0, %v1476_v25  ;;  %v1414_v25 = vmov 0  }
  0x1d   :  { %304 = vmatpush.bf16.msra.mxu3 %v1523_v58  ;;  %387 = vmatpush.bf16.msrb.mxu2 %v1460_v7 }
  0x1f   :  { %327 = vmatpush.bf16.msrb.mxu1 %v1530_v1 }
  0x20   :  { %316 = vmatpush.bf16.msrb.mxu0 %v1525_v59 }
  0x21   :  { %305 = vmatpush.bf16.msra.mxu3 %v1534_v4  ;;  %388 = vmatpush.bf16.msrb.mxu2 %v1463_v13 }
  0x23   :  { %328 = vmatpush.bf16.msrb.mxu1 %v1539_v11 }
  0x24   :  { %317 = vmatpush.bf16.msrb.mxu0 %v1536_v5 }
  0x25   :  { %306 = vmatpush.bf16.msra.mxu3 %v1544_v16  ;;  %389 = vmatpush.bf16.msrb.mxu2 %v1472_v20 }
  0x27   :  { %329 = vmatpush.bf16.msrb.mxu1 %v1551_v22 }
  0x28   :  { %318 = vmatpush.bf16.msrb.mxu0 %v1546_v17  ;;  %307 = vmatmul.bf16.vlgmr.msra.gmra.mxu3 %v1414_v25 }
  0x29   :  { %400 = vmatpush.bf16.msrb.mxu3 %v1465_v14  ;;  %390 = vmatpush.bf16.msrb.mxu2 %v1494_v32 }
  0x2b   :  { %330 = vmatpush.bf16.msrb.mxu1 %v1560_v27 }
  0x2c   :  { %319 = vmatpush.bf16.msrb.mxu0 %v1556_v26 }
  0x2d   :  { %401 = vmatpush.bf16.msrb.mxu3 %v1474_v21  ;;  %391 = vmatpush.bf16.msrb.mxu2 %v1502_v44 }
  0x2f   :  { %320 = vmatmul.bf16.vlgmr.msrb.gmra.mxu0 %v1414_v25  ;;  %331 = vmatpush.bf16.msrb.mxu1 %v1567_v30 }
  0x30   :  { %413 = vmatpush.bf16.msra.mxu0 %v1498_v41 }
  0x31   :  { %402 = vmatpush.bf16.msrb.mxu3 %v1496_v33  ;;  %392 = vmatpush.bf16.msrb.mxu2 %v1523_v58 }
  0x33   :  { %332 = vmatpush.bf16.msrb.mxu1 %v1573_v35 }
  0x34   :  { %414 = vmatpush.bf16.msra.mxu0 %v1513_v52 }
  0x35   :  { %403 = vmatpush.bf16.msrb.mxu3 %v1504_v45  ;;  %393 = vmatpush.bf16.msrb.mxu2 %v1534_v4 }
  0x36   :  { %333 = vmatmul.bf16.vlgmr.msrb.gmra.mxu1 %v1414_v25  ;;  %v1649_v25 = vperm.slane %v1117_v42, 2 }
  0x37   :  { %475 = vmatpush.bf16.msra.mxu1 %v1460_v7 }
  0x38   :  { %415 = vmatpush.bf16.msra.mxu0 %v1530_v1 }
  0x39   :  { %404 = vmatpush.bf16.msrb.mxu3 %v1525_v59  ;;  %394 = vmatpush.bf16.msrb.mxu2 %v1544_v16 }
  0x3b   :  { %476 = vmatpush.bf16.msra.mxu1 %v1463_v13 }
  0x3c   :  { %416 = vmatpush.bf16.msra.mxu0 %v1539_v11 }
  0x3d   :  { %405 = vmatpush.bf16.msrb.mxu3 %v1536_v5  ;;  %488 = vmatpush.bf16.msra.mxu2 %v1465_v14 }
  0x3f   :  { %477 = vmatpush.bf16.msra.mxu1 %v1472_v20 }
  0x40   :  { %417 = vmatpush.bf16.msra.mxu0 %v1551_v22 }
  0x41   :  { %406 = vmatpush.bf16.msrb.mxu3 %v1546_v17  ;;  %489 = vmatpush.bf16.msra.mxu2 %v1474_v21 }
  0x43   :  { %478 = vmatpush.bf16.msra.mxu1 %v1494_v32 }
  0x44   :  { %418 = vmatpush.bf16.msra.mxu0 %v1560_v27 }
  0x45   :  { %407 = vmatpush.bf16.msrb.mxu3 %v1556_v26  ;;  %490 = vmatpush.bf16.msra.mxu2 %v1496_v33 }
  0x47   :  { %479 = vmatpush.bf16.msra.mxu1 %v1502_v44 }
  0x48   :  { %419 = vmatpush.bf16.msra.mxu0 %v1567_v30 }
  0x49   :  { %501 = vmatpush.bf16.msra.mxu3 %v1498_v41  ;;  %491 = vmatpush.bf16.msra.mxu2 %v1504_v45 }
  0x4b   :  { %480 = vmatpush.bf16.msra.mxu1 %v1523_v58 }
  0x4c   :  { %420 = vmatpush.bf16.msra.mxu0 %v1573_v35 }
  0x4d   :  { %502 = vmatpush.bf16.msra.mxu3 %v1513_v52  ;;  %492 = vmatpush.bf16.msra.mxu2 %v1525_v59 }
  0x4f   :  { %481 = vmatpush.bf16.msra.mxu1 %v1534_v4 }
  0x50   :  { %563 = vmatpush.bf16.msrb.mxu0 %v1460_v7 }
  0x51   :  { %503 = vmatpush.bf16.msra.mxu3 %v1530_v1  ;;  %493 = vmatpush.bf16.msra.mxu2 %v1536_v5 }
  0x53   :  { %482 = vmatpush.bf16.msra.mxu1 %v1544_v16 }
  0x54   :  { %564 = vmatpush.bf16.msrb.mxu0 %v1463_v13 }
  0x55   :  { %504 = vmatpush.bf16.msra.mxu3 %v1539_v11  ;;  %494 = vmatpush.bf16.msra.mxu2 %v1546_v17 }
  0x57   :  { %576 = vmatpush.bf16.msrb.mxu1 %v1465_v14 }
  0x58   :  { %565 = vmatpush.bf16.msrb.mxu0 %v1472_v20 }
  0x59   :  { %505 = vmatpush.bf16.msra.mxu3 %v1551_v22  ;;  %495 = vmatpush.bf16.msra.mxu2 %v1556_v26 }
  0x5b   :  { %577 = vmatpush.bf16.msrb.mxu1 %v1474_v21 }
  0x5c   :  { %566 = vmatpush.bf16.msrb.mxu0 %v1494_v32 }
  0x5d   :  { %506 = vmatpush.bf16.msra.mxu3 %v1560_v27 }
  0x5f   :  { %578 = vmatpush.bf16.msrb.mxu1 %v1496_v33 }
  0x60   :  { %567 = vmatpush.bf16.msrb.mxu0 %v1502_v44 }
  0x61   :  { %507 = vmatpush.bf16.msra.mxu3 %v1567_v30 }
  0x63   :  { %579 = vmatpush.bf16.msrb.mxu1 %v1504_v45 }
  0x64   :  { %568 = vmatpush.bf16.msrb.mxu0 %v1523_v58 }
  0x65   :  { %508 = vmatpush.bf16.msra.mxu3 %v1573_v35 }
  0x67   :  { %580 = vmatpush.bf16.msrb.mxu1 %v1525_v59 }
  0x68   :  { %569 = vmatpush.bf16.msrb.mxu0 %v1534_v4 }
  0x6b   :  { %581 = vmatpush.bf16.msrb.mxu1 %v1536_v5 }
  0x6c   :  { %570 = vmatpush.bf16.msrb.mxu0 %v1544_v16 }
  0x6f   :  { %582 = vmatpush.bf16.msrb.mxu1 %v1546_v17 }
  0x73   :  { %583 = vmatpush.bf16.msrb.mxu1 %v1556_v26 }
  0x8c   :  { %v100_v36 = vpop.f32.mrf.mxu0 }
  0x8d   :  { %v1644_v55 = vadd.f32 %v100_v36, %v81_v48  ;;  %v83_v36 = vperm.slane %v47_v40, 2 }
  0x93   :  { %v113_v38 = vpop.f32.mrf.mxu1 }
  0x94   :  { %v102_v37 = vpop.f32.mrf.mxu0  ;;  %v1639_v49 = vadd.f32 %v113_v38, %v82_v43 }
  0x9b   :  { %v115_v39 = vpop.f32.mrf.mxu1 }
  0x9f   :  { %v126_v46 = vpop.f32.mrf.mxu2 }
  0xa7   :  { %v128_v60 = vpop.f32.mrf.mxu2 }
  0xab   :  { %v308_v54 = vpop.f32.mrf.mxu3 }
  0xac   :  { %v321_v51 = vpop.f32.mrf.mxu0  ;;  %v309_v57 = vadd.f32 %v308_v54, %v1641_v50 }
  0xad   :  { %v322_v53 = vadd.f32 %v321_v51, %v1637_v47  ;;  %v1652_v51 = vadd.f32 %v126_v46, %v83_v36 }
  0xae   :  { %v338_v62 = vadd.f32 %v309_v57, %v1644_v55 }
  0xaf   :  { %v339_v56 = vadd.f32 %v322_v53, %v1639_v49 }
  0xb0   :  { %v1214_v63 = vmul.f32 -1.442695, %v338_v62 }
  0xb1   :  { %v1215_v61 = vmul.f32 -1.442695, %v339_v56 }
  0xb3   :  { %1305 = vpow2.f32 %v1215_v61  ;;  %v310_v2 = vpop.f32.mrf.mxu3  ;;  %v334_v3 = vpop.f32.mrf.mxu1 }
  0xb4   :  { %v323_v0 = vpop.f32.mrf.mxu0  ;;  %1307 = vpow2.f32 %v1214_v63  ;;  %v335_v38 = vadd.f32 %v334_v3, %v1649_v25 }
  0xb9   :  { %v1306_v6 = vpop.eup %1305 }
  0xba   :  { %v347_v8 = vadd.f32 1.0, %v1306_v6  ;;  %v1308_v9 = vpop.eup %1307 }
  0xbb   :  { %v346_v10 = vadd.f32 1.0, %v1308_v9  ;;  %v336_v12 = vpop.f32.mrf.mxu1 }
  0xbc   :  { %1309 = vrcp.f32 %v347_v8  ;;  %vm368_vm5 = vweird.f32 %v347_v8  ;;  %v374_v56 = vand.u32 2147483648, %v347_v8  ;;  %v372_v57 = vand.u32 2147483647, %v347_v8 }
  0xbd   :  { %1311 = vrcp.f32 %v346_v10  ;;  %v359_v29 = vand.u32 2147483648, %v346_v10  ;;  %v357_v34 = vand.u32 2147483647, %v346_v10  ;;  %vm353_vm2 = vweird.f32 %v346_v10 }
  0xbe   :  { %v375_v61 = vor.u32 1.1754944e-38, %v374_v56  ;;  %vm373_vm8 = vcmp.eq.f32.partialorder %v372_v57, 8.507059e+37 }
  0xbf   :  { %v360_v43 = vor.u32 1.1754944e-38, %v359_v29  ;;  %vm358_vm4 = vcmp.eq.f32.partialorder %v357_v34, 8.507059e+37 }
  0xc2   :  { %v1310_v15 = vpop.eup %1309 }
  0xc3   :  { %v364_v18 = vmul.f32 %v1310_v15, %v347_v8  ;;  %v1312_v19 = vpop.eup %1311  ;;  %vm369_vm6 = vweird.f32 %v1310_v15 }
  0xc4   :  { %v349_v23 = vmul.f32 %v1312_v19, %v346_v10  ;;  %vm354_vm1 = vweird.f32 %v1312_v19  ;;  %vm370_vm7 = vmor %vm368_vm5, %vm369_vm6 }
  0xc5   :  { %v365_v24 = vsub.f32 1.0, %v364_v18  ;;  %vm355_vm3 = vmor %vm353_vm2, %vm354_vm1 }
  0xc6   :  { %v350_v28 = vsub.f32 1.0, %v349_v23 }
  0xc7   :  { %v366_v37 = vmul.f32 %v1310_v15, %v365_v24 }
  0xc8   :  { %v351_v31 = vmul.f32 %v1312_v19, %v350_v28 }
  0xc9   :  { %v367_v42 = vadd.f32 %v1310_v15, %v366_v37 }
  0xca   :  { %v352_v39 = vadd.f32 %v1312_v19, %v351_v31 }
  0xcb   :  { %v371_v60 = vsel %vm370_vm7, %v1310_v15, %v367_v42 }
  0xcc   :  { %v356_v48 = vsel %vm355_vm3, %v1312_v19, %v352_v39  ;;  %v376_v62 = vsel %vm373_vm8, %v375_v61, %v371_v60 }
  0xcd   :  { %v361_v53 = vsel %vm358_vm4, %v360_v43, %v356_v48  ;;  %v381_v63 = vsub.f32 1.0, %v376_v62  ;;  %v383_v46 = vmul.f32 0.0, %v376_v62 }
  0xce   :  { %v378_v54 = vmul.f32 %v361_v53, %v335_v38 }
  0xd0   :  { %v379_v40 = vadd.f32 %v378_v54, %v1652_v51 }
  0xd2   :  { %1313 = vtanh.f32 %v379_v40 }
  0xd8   :  { %v1314_v0 = vpop.eup %1313 }
  0xd9   :  { %v382_v2 = vmul.f32 %v1314_v0, %v381_v63 }
  0xdb   :  { %v1655_v3 = vadd.f32 %v383_v46, %v382_v2 }
  0xdd   :  { %385 = vst [vmem:[#allocation2] sm:$0x1] %v1655_v3  ;;  %v386_v6 = vpack.c.bf16 %v1655_v3, %v1655_v3 }
  0xdf   :  { %395 = vmatmul.bf16.vlgmr.msrb.gmra.mxu2 %v386_v6  ;;  %408 = vmatmul.bf16.vlgmr.msrb.gmra.mxu3 %v386_v6 }
  0xe0   :  { %421 = vmatmul.bf16.vlgmr.msra.gmra.mxu0 %v386_v6  ;;  %589 = vmatpush.bf16.msrb.mxu2 %v1498_v41 }
  0xe1   :  { %651 = vmatpush.bf16.msrb.mxu3 %v1460_v7  ;;  %664 = vmatpush.bf16.msra.mxu0 %v1465_v14 }
  0xe4   :  { %590 = vmatpush.bf16.msrb.mxu2 %v1513_v52 }
  0xe5   :  { %652 = vmatpush.bf16.msrb.mxu3 %v1463_v13  ;;  %665 = vmatpush.bf16.msra.mxu0 %v1474_v21 }
  0xe8   :  { %591 = vmatpush.bf16.msrb.mxu2 %v1530_v1 }
  0xe9   :  { %653 = vmatpush.bf16.msrb.mxu3 %v1472_v20  ;;  %666 = vmatpush.bf16.msra.mxu0 %v1496_v33 }
  0xec   :  { %592 = vmatpush.bf16.msrb.mxu2 %v1539_v11 }
  0xed   :  { %654 = vmatpush.bf16.msrb.mxu3 %v1494_v32  ;;  %667 = vmatpush.bf16.msra.mxu0 %v1504_v45 }
  0xf0   :  { %593 = vmatpush.bf16.msrb.mxu2 %v1551_v22 }
  0xf1   :  { %655 = vmatpush.bf16.msrb.mxu3 %v1502_v44  ;;  %668 = vmatpush.bf16.msra.mxu0 %v1525_v59 }
  0xf4   :  { %594 = vmatpush.bf16.msrb.mxu2 %v1560_v27 }
  0xf5   :  { %656 = vmatpush.bf16.msrb.mxu3 %v1523_v58  ;;  %669 = vmatpush.bf16.msra.mxu0 %v1536_v5 }
  0xf8   :  { %595 = vmatpush.bf16.msrb.mxu2 %v1567_v30 }
  0xf9   :  { %657 = vmatpush.bf16.msrb.mxu3 %v1534_v4  ;;  %670 = vmatpush.bf16.msra.mxu0 %v1546_v17 }
  0xfc   :  { %596 = vmatpush.bf16.msrb.mxu2 %v1573_v35 }
  0xfd   :  { %658 = vmatpush.bf16.msrb.mxu3 %v1544_v16  ;;  %671 = vmatpush.bf16.msra.mxu0 %v1556_v26 }
 0x15d   :  { %v422_v8 = vpop.f32.mrf.mxu0 }
 0x15e   :  { %v423_v63 = vadd.f32 %v422_v8, %v1649_v25 }
 0x162   :  { %v396_v9 = vpop.f32.mrf.mxu2  ;;  %v409_v10 = vpop.f32.mrf.mxu3 }
 0x163   :  { %v397_v12 = vadd.f32 %v396_v9, %v1641_v50  ;;  %v410_v15 = vadd.f32 %v409_v10, %v1637_v47 }
 0x165   :  { %v426_v18 = vadd.f32 %v397_v12, %v1644_v55  ;;  %v427_v19 = vadd.f32 %v410_v15, %v1639_v49  ;;  %v424_v23 = vpop.f32.mrf.mxu0 }
 0x167   :  { %v1216_v24 = vmul.f32 -1.442695, %v426_v18  ;;  %v1217_v28 = vmul.f32 -1.442695, %v427_v19 }
 0x169   :  { %1315 = vpow2.f32 %v1216_v24 }
 0x16a   :  { %1317 = vpow2.f32 %v1217_v28  ;;  %v398_v29 = vpop.f32.mrf.mxu2  ;;  %v411_v31 = vpop.f32.mrf.mxu3 }
 0x16f   :  { %v1316_v34 = vpop.eup %1315 }
 0x170   :  { %v1318_v36 = vpop.eup %1317  ;;  %v434_v37 = vadd.f32 1.0, %v1316_v34 }
 0x171   :  { %v435_v38 = vadd.f32 1.0, %v1318_v36 }
 0x172   :  { %1319 = vrcp.f32 %v434_v37  ;;  %v447_v54 = vand.u32 2147483648, %v434_v37  ;;  %v445_v40 = vand.u32 2147483647, %v434_v37  ;;  %vm441_vm10 = vweird.f32 %v434_v37 }
 0x173   :  { %1321 = vrcp.f32 %v435_v38  ;;  %v462_v9 = vand.u32 2147483648, %v435_v38  ;;  %vm456_vm14 = vweird.f32 %v435_v38  ;;  %v460_v10 = vand.u32 2147483647, %v435_v38 }
 0x174   :  { %v448_v62 = vor.u32 1.1754944e-38, %v447_v54  ;;  %vm446_vm12 = vcmp.eq.f32.partialorder %v445_v40, 8.507059e+37 }
 0x175   :  { %v463_v18 = vor.u32 1.1754944e-38, %v462_v9  ;;  %vm461_vm0 = vcmp.eq.f32.partialorder %v460_v10, 8.507059e+37 }
 0x178   :  { %v1320_v39 = vpop.eup %1319 }
 0x179   :  { %v1322_v43 = vpop.eup %1321  ;;  %v437_v48 = vmul.f32 %v1320_v39, %v434_v37  ;;  %vm442_vm9 = vweird.f32 %v1320_v39 }
 0x17a   :  { %v452_v53 = vmul.f32 %v1322_v43, %v435_v38  ;;  %vm443_vm11 = vmor %vm441_vm10, %vm442_vm9  ;;  %vm457_vm13 = vweird.f32 %v1322_v43 }
 0x17b   :  { %v438_v42 = vsub.f32 1.0, %v437_v48  ;;  %vm458_vm15 = vmor %vm456_vm14, %vm457_vm13 }
 0x17c   :  { %v453_v56 = vsub.f32 1.0, %v452_v53 }
 0x17d   :  { %v439_v57 = vmul.f32 %v1320_v39, %v438_v42 }
 0x17e   :  { %v454_v60 = vmul.f32 %v1322_v43, %v453_v56 }
 0x17f   :  { %v440_v61 = vadd.f32 %v1320_v39, %v439_v57 }
 0x180   :  { %v455_v46 = vadd.f32 %v1322_v43, %v454_v60 }
 0x181   :  { %v444_v0 = vsel %vm443_vm11, %v1320_v39, %v440_v61 }
 0x182   :  { %v449_v2 = vsel %vm446_vm12, %v448_v62, %v444_v0  ;;  %v459_v15 = vsel %vm458_vm15, %v1322_v43, %v455_v46 }
 0x183   :  { %v466_v6 = vmul.f32 %v449_v2, %v423_v63  ;;  %v464_v19 = vsel %vm461_vm0, %v463_v18, %v459_v15 }
 0x184   :  { %v469_v23 = vsub.f32 1.0, %v464_v19  ;;  %v471_v28 = vmul.f32 %v464_v19, %v1655_v3 }
 0x185   :  { %v467_v12 = vadd.f32 %v466_v6, %v1652_v51 }
 0x187   :  { %1323 = vtanh.f32 %v467_v12 }
 0x18d   :  { %v1324_v24 = vpop.eup %1323 }
 0x18e   :  { %v470_v8 = vmul.f32 %v1324_v24, %v469_v23 }
 0x190   :  { %v1691_v29 = vadd.f32 %v471_v28, %v470_v8 }
 0x192   :  { %473 = vst [vmem:[#allocation2 + $0x1] sm:$0x1] %v1691_v29  ;;  %v474_v31 = vpack.c.bf16 %v1691_v29, %v1691_v29 }
 0x194   :  { %483 = vmatmul.bf16.vlgmr.msra.gmra.mxu1 %v474_v31  ;;  %496 = vmatmul.bf16.vlgmr.msra.gmra.mxu2 %v474_v31 }
 0x195   :  { %509 = vmatmul.bf16.vlgmr.msra.gmra.mxu3 %v474_v31  ;;  %677 = vmatpush.bf16.msra.mxu1 %v1498_v41 }
 0x196   :  { %739 = vmatpush.bf16.msra.mxu2 %v1460_v7  ;;  %752 = vmatpush.bf16.msra.mxu3 %v1465_v14 }
 0x199   :  { %678 = vmatpush.bf16.msra.mxu1 %v1513_v52 }
 0x19a   :  { %740 = vmatpush.bf16.msra.mxu2 %v1463_v13  ;;  %753 = vmatpush.bf16.msra.mxu3 %v1474_v21 }
 0x19d   :  { %679 = vmatpush.bf16.msra.mxu1 %v1530_v1 }
 0x19e   :  { %741 = vmatpush.bf16.msra.mxu2 %v1472_v20  ;;  %754 = vmatpush.bf16.msra.mxu3 %v1496_v33 }
 0x1a1   :  { %680 = vmatpush.bf16.msra.mxu1 %v1539_v11 }
 0x1a2   :  { %742 = vmatpush.bf16.msra.mxu2 %v1494_v32  ;;  %755 = vmatpush.bf16.msra.mxu3 %v1504_v45 }
 0x1a5   :  { %681 = vmatpush.bf16.msra.mxu1 %v1551_v22 }
 0x1a6   :  { %743 = vmatpush.bf16.msra.mxu2 %v1502_v44  ;;  %756 = vmatpush.bf16.msra.mxu3 %v1525_v59 }
 0x1a9   :  { %682 = vmatpush.bf16.msra.mxu1 %v1560_v27 }
 0x1aa   :  { %744 = vmatpush.bf16.msra.mxu2 %v1523_v58  ;;  %757 = vmatpush.bf16.msra.mxu3 %v1536_v5 }
 0x1ad   :  { %683 = vmatpush.bf16.msra.mxu1 %v1567_v30 }
 0x1ae   :  { %745 = vmatpush.bf16.msra.mxu2 %v1534_v4  ;;  %758 = vmatpush.bf16.msra.mxu3 %v1546_v17 }
 0x1b1   :  { %684 = vmatpush.bf16.msra.mxu1 %v1573_v35 }
 0x1b2   :  { %746 = vmatpush.bf16.msra.mxu2 %v1544_v16  ;;  %759 = vmatpush.bf16.msra.mxu3 %v1556_v26 }
 0x211   :  { %v484_v3 = vpop.f32.mrf.mxu1 }
 0x212   :  { %v485_v34 = vadd.f32 %v484_v3, %v1641_v50 }
 0x214   :  { %v514_v36 = vadd.f32 %v485_v34, %v1644_v55 }
 0x216   :  { %v1218_v37 = vmul.f32 -1.442695, %v514_v36 }
 0x217   :  { %v497_v38 = vpop.f32.mrf.mxu2 }
 0x218   :  { %1325 = vpow2.f32 %v1218_v37  ;;  %v498_v39 = vadd.f32 %v497_v38, %v1637_v47  ;;  %v510_v43 = vpop.f32.mrf.mxu3 }
 0x219   :  { %v486_v48 = vpop.f32.mrf.mxu1  ;;  %v511_v19 = vadd.f32 %v510_v43, %v1649_v25 }
 0x21a   :  { %v515_v53 = vadd.f32 %v498_v39, %v1639_v49 }
 0x21c   :  { %v1219_v42 = vmul.f32 -1.442695, %v515_v53 }
 0x21e   :  { %v1326_v54 = vpop.eup %1325  ;;  %1327 = vpow2.f32 %v1219_v42 }
 0x21f   :  { %v522_v56 = vadd.f32 1.0, %v1326_v54  ;;  %v499_v57 = vpop.f32.mrf.mxu2 }
 0x220   :  { %v512_v40 = vpop.f32.mrf.mxu3 }
 0x221   :  { %1329 = vrcp.f32 %v522_v56  ;;  %v535_v2 = vand.u32 2147483648, %v522_v56  ;;  %v533_v6 = vand.u32 2147483647, %v522_v56  ;;  %vm529_vm2 = vweird.f32 %v522_v56 }
 0x223   :  { %v536_v15 = vor.u32 1.1754944e-38, %v535_v2  ;;  %vm534_vm4 = vcmp.eq.f32.partialorder %v533_v6, 8.507059e+37 }
 0x224   :  { %v1328_v60 = vpop.eup %1327 }
 0x225   :  { %v523_v61 = vadd.f32 1.0, %v1328_v60 }
 0x227   :  { %v1330_v62 = vpop.eup %1329  ;;  %1331 = vrcp.f32 %v523_v61  ;;  %v550_v28 = vand.u32 2147483648, %v523_v61  ;;  %v548_v3 = vand.u32 2147483647, %v523_v61  ;;  %vm544_vm6 = vweird.f32 %v523_v61 }
 0x228   :  { %v525_v63 = vmul.f32 %v1330_v62, %v522_v56  ;;  %vm530_vm1 = vweird.f32 %v1330_v62 }
 0x229   :  { %vm531_vm3 = vmor %vm529_vm2, %vm530_vm1  ;;  %v551_v37 = vor.u32 1.1754944e-38, %v550_v28  ;;  %vm549_vm8 = vcmp.eq.f32.partialorder %v548_v3, 8.507059e+37 }
 0x22a   :  { %v526_v0 = vsub.f32 1.0, %v525_v63 }
 0x22c   :  { %v527_v46 = vmul.f32 %v1330_v62, %v526_v0 }
 0x22d   :  { %v1332_v9 = vpop.eup %1331 }
 0x22e   :  { %v540_v10 = vmul.f32 %v1332_v9, %v523_v61  ;;  %v528_v12 = vadd.f32 %v1330_v62, %v527_v46  ;;  %vm545_vm5 = vweird.f32 %v1332_v9 }
 0x22f   :  { %vm546_vm7 = vmor %vm544_vm6, %vm545_vm5 }
 0x230   :  { %v541_v18 = vsub.f32 1.0, %v540_v10  ;;  %v532_v23 = vsel %vm531_vm3, %v1330_v62, %v528_v12 }
 0x231   :  { %v537_v24 = vsel %vm534_vm4, %v536_v15, %v532_v23 }
 0x232   :  { %v542_v8 = vmul.f32 %v1332_v9, %v541_v18  ;;  %v554_v31 = vmul.f32 %v537_v24, %v511_v19 }
 0x234   :  { %v543_v34 = vadd.f32 %v1332_v9, %v542_v8  ;;  %v555_v36 = vadd.f32 %v554_v31, %v1652_v51 }
 0x236   :  { %v547_v38 = vsel %vm546_vm7, %v1332_v9, %v543_v34  ;;  %1333 = vtanh.f32 %v555_v36 }
 0x237   :  { %v552_v39 = vsel %vm549_vm8, %v551_v37, %v547_v38 }
 0x238   :  { %v557_v48 = vsub.f32 1.0, %v552_v39  ;;  %v559_v42 = vmul.f32 %v552_v39, %v1691_v29 }
 0x23c   :  { %v1334_v43 = vpop.eup %1333 }
 0x23d   :  { %v558_v53 = vmul.f32 %v1334_v43, %v557_v48 }
 0x23f   :  { %v1727_v54 = vadd.f32 %v559_v42, %v558_v53 }
 0x241   :  { %561 = vst [vmem:[#allocation2 + $0x2] sm:$0x1] %v1727_v54  ;;  %v562_v56 = vpack.c.bf16 %v1727_v54, %v1727_v54 }
 0x243   :  { %571 = vmatmul.bf16.vlgmr.msrb.gmra.mxu0 %v562_v56  ;;  %584 = vmatmul.bf16.vlgmr.msrb.gmra.mxu1 %v562_v56 }
 0x244   :  { %597 = vmatmul.bf16.vlgmr.msrb.gmra.mxu2 %v562_v56  ;;  %765 = vmatpush.bf16.msrb.mxu0 %v1498_v41 }
 0x245   :  { %827 = vmatpush.bf16.msrb.mxu1 %v1460_v7  ;;  %840 = vmatpush.bf16.msrb.mxu2 %v1465_v14 }
 0x248   :  { %766 = vmatpush.bf16.msrb.mxu0 %v1513_v52 }
 0x249   :  { %828 = vmatpush.bf16.msrb.mxu1 %v1463_v13  ;;  %841 = vmatpush.bf16.msrb.mxu2 %v1474_v21 }
 0x24c   :  { %767 = vmatpush.bf16.msrb.mxu0 %v1530_v1 }
 0x24d   :  { %829 = vmatpush.bf16.msrb.mxu1 %v1472_v20  ;;  %842 = vmatpush.bf16.msrb.mxu2 %v1496_v33 }
 0x250   :  { %768 = vmatpush.bf16.msrb.mxu0 %v1539_v11 }
 0x251   :  { %830 = vmatpush.bf16.msrb.mxu1 %v1494_v32  ;;  %843 = vmatpush.bf16.msrb.mxu2 %v1504_v45 }
 0x254   :  { %769 = vmatpush.bf16.msrb.mxu0 %v1551_v22 }
 0x255   :  { %831 = vmatpush.bf16.msrb.mxu1 %v1502_v44  ;;  %844 = vmatpush.bf16.msrb.mxu2 %v1525_v59 }
 0x258   :  { %770 = vmatpush.bf16.msrb.mxu0 %v1560_v27 }
 0x259   :  { %832 = vmatpush.bf16.msrb.mxu1 %v1523_v58  ;;  %845 = vmatpush.bf16.msrb.mxu2 %v1536_v5 }
 0x25c   :  { %771 = vmatpush.bf16.msrb.mxu0 %v1567_v30 }
 0x25d   :  { %833 = vmatpush.bf16.msrb.mxu1 %v1534_v4  ;;  %846 = vmatpush.bf16.msrb.mxu2 %v1546_v17 }
 0x260   :  { %772 = vmatpush.bf16.msrb.mxu0 %v1573_v35 }
 0x261   :  { %834 = vmatpush.bf16.msrb.mxu1 %v1544_v16  ;;  %847 = vmatpush.bf16.msrb.mxu2 %v1556_v26 }
 0x2c0   :  { %v572_v29 = vpop.f32.mrf.mxu0  ;;  %v585_v57 = vpop.f32.mrf.mxu1 }
 0x2c1   :  { %v573_v40 = vadd.f32 %v572_v29, %v1641_v50  ;;  %v586_v60 = vadd.f32 %v585_v57, %v1637_v47 }
 0x2c3   :  { %v602_v61 = vadd.f32 %v573_v40, %v1644_v55  ;;  %v603_v62 = vadd.f32 %v586_v60, %v1639_v49 }
 0x2c5   :  { %v1220_v63 = vmul.f32 -1.442695, %v602_v61  ;;  %v1221_v0 = vmul.f32 -1.442695, %v603_v62 }
 0x2c7   :  { %1335 = vpow2.f32 %v1220_v63  ;;  %v598_v2 = vpop.f32.mrf.mxu2 }
 0x2c8   :  { %1337 = vpow2.f32 %v1221_v0  ;;  %v574_v46 = vpop.f32.mrf.mxu0  ;;  %v587_v6 = vpop.f32.mrf.mxu1  ;;  %v599_v48 = vadd.f32 %v598_v2, %v1649_v25 }
 0x2cd   :  { %v1336_v9 = vpop.eup %1335 }
 0x2ce   :  { %v1338_v10 = vpop.eup %1337  ;;  %v610_v12 = vadd.f32 1.0, %v1336_v9 }
 0x2cf   :  { %v611_v15 = vadd.f32 1.0, %v1338_v10  ;;  %v600_v18 = vpop.f32.mrf.mxu2 }
 0x2d0   :  { %1339 = vrcp.f32 %v610_v12  ;;  %v623_v3 = vand.u32 2147483648, %v610_v12  ;;  %v621_v36 = vand.u32 2147483647, %v610_v12  ;;  %vm617_vm10 = vweird.f32 %v610_v12 }
 0x2d1   :  { %1341 = vrcp.f32 %v611_v15  ;;  %v638_v56 = vand.u32 2147483648, %v611_v15  ;;  %vm632_vm14 = vweird.f32 %v611_v15  ;;  %v636_v57 = vand.u32 2147483647, %v611_v15 }
 0x2d2   :  { %v624_v39 = vor.u32 1.1754944e-38, %v623_v3  ;;  %vm622_vm12 = vcmp.eq.f32.partialorder %v621_v36, 8.507059e+37 }
 0x2d3   :  { %v639_v61 = vor.u32 1.1754944e-38, %v638_v56  ;;  %vm637_vm0 = vcmp.eq.f32.partialorder %v636_v57, 8.507059e+37 }
 0x2d6   :  { %v1340_v19 = vpop.eup %1339 }
 0x2d7   :  { %v1342_v23 = vpop.eup %1341  ;;  %v613_v24 = vmul.f32 %v1340_v19, %v610_v12  ;;  %vm618_vm9 = vweird.f32 %v1340_v19 }
 0x2d8   :  { %v628_v8 = vmul.f32 %v1342_v23, %v611_v15  ;;  %vm619_vm11 = vmor %vm617_vm10, %vm618_vm9  ;;  %vm633_vm13 = vweird.f32 %v1342_v23 }
 0x2d9   :  { %v614_v28 = vsub.f32 1.0, %v613_v24  ;;  %vm634_vm15 = vmor %vm632_vm14, %vm633_vm13 }
 0x2da   :  { %v629_v31 = vsub.f32 1.0, %v628_v8 }
 0x2db   :  { %v615_v34 = vmul.f32 %v1340_v19, %v614_v28 }
 0x2dc   :  { %v630_v37 = vmul.f32 %v1342_v23, %v629_v31 }
 0x2dd   :  { %v616_v38 = vadd.f32 %v1340_v19, %v615_v34 }
 0x2de   :  { %v631_v42 = vadd.f32 %v1342_v23, %v630_v37 }
 0x2df   :  { %v620_v43 = vsel %vm619_vm11, %v1340_v19, %v616_v38 }
 0x2e0   :  { %v625_v53 = vsel %vm622_vm12, %v624_v39, %v620_v43  ;;  %v635_v60 = vsel %vm634_vm15, %v1342_v23, %v631_v42 }
 0x2e1   :  { %v642_v29 = vmul.f32 %v625_v53, %v599_v48  ;;  %v640_v62 = vsel %vm637_vm0, %v639_v61, %v635_v60 }
 0x2e2   :  { %v645_v63 = vsub.f32 1.0, %v640_v62  ;;  %v647_v46 = vmul.f32 %v640_v62, %v1727_v54 }
 0x2e3   :  { %v643_v40 = vadd.f32 %v642_v29, %v1652_v51 }
 0x2e5   :  { %1343 = vtanh.f32 %v643_v40 }
 0x2eb   :  { %v1344_v0 = vpop.eup %1343 }
 0x2ec   :  { %v646_v2 = vmul.f32 %v1344_v0, %v645_v63 }
 0x2ee   :  { %v1763_v6 = vadd.f32 %v647_v46, %v646_v2 }
 0x2f0   :  { %649 = vst [vmem:[#allocation2 + $0x3] sm:$0x1] %v1763_v6  ;;  %v650_v9 = vpack.c.bf16 %v1763_v6, %v1763_v6 }
 0x2f2   :  { %659 = vmatmul.bf16.vlgmr.msrb.gmra.mxu3 %v650_v9  ;;  %672 = vmatmul.bf16.vlgmr.msra.gmra.mxu0 %v650_v9 }
 0x2f3   :  { %685 = vmatmul.bf16.vlgmr.msra.gmra.mxu1 %v650_v9  ;;  %853 = vmatpush.bf16.msrb.mxu3 %v1498_v41 }
 0x2f4   :  { %915 = vmatpush.bf16.msra.mxu0 %v1460_v7  ;;  %928 = vmatpush.bf16.msra.mxu1 %v1465_v14 }
 0x2f7   :  { %854 = vmatpush.bf16.msrb.mxu3 %v1513_v52 }
 0x2f8   :  { %916 = vmatpush.bf16.msra.mxu0 %v1463_v13  ;;  %929 = vmatpush.bf16.msra.mxu1 %v1474_v21 }
 0x2fb   :  { %855 = vmatpush.bf16.msrb.mxu3 %v1530_v1 }
 0x2fc   :  { %917 = vmatpush.bf16.msra.mxu0 %v1472_v20  ;;  %930 = vmatpush.bf16.msra.mxu1 %v1496_v33 }
 0x2ff   :  { %856 = vmatpush.bf16.msrb.mxu3 %v1539_v11 }
 0x300   :  { %918 = vmatpush.bf16.msra.mxu0 %v1494_v32  ;;  %931 = vmatpush.bf16.msra.mxu1 %v1504_v45 }
 0x303   :  { %857 = vmatpush.bf16.msrb.mxu3 %v1551_v22 }
 0x304   :  { %919 = vmatpush.bf16.msra.mxu0 %v1502_v44  ;;  %932 = vmatpush.bf16.msra.mxu1 %v1525_v59 }
 0x307   :  { %858 = vmatpush.bf16.msrb.mxu3 %v1560_v27 }
 0x308   :  { %920 = vmatpush.bf16.msra.mxu0 %v1523_v58  ;;  %933 = vmatpush.bf16.msra.mxu1 %v1536_v5 }
 0x30b   :  { %859 = vmatpush.bf16.msrb.mxu3 %v1567_v30 }
 0x30c   :  { %921 = vmatpush.bf16.msra.mxu0 %v1534_v4  ;;  %934 = vmatpush.bf16.msra.mxu1 %v1546_v17 }
 0x30f   :  { %860 = vmatpush.bf16.msrb.mxu3 %v1573_v35 }
 0x310   :  { %922 = vmatpush.bf16.msra.mxu0 %v1544_v16  ;;  %935 = vmatpush.bf16.msra.mxu1 %v1556_v26 }
 0x36f   :  { %v673_v7 = vpop.f32.mrf.mxu0 }
 0x370   :  { %v674_v13 = vadd.f32 %v673_v7, %v1637_v47  ;;  %v686_v14 = vpop.f32.mrf.mxu1 }
 0x371   :  { %v687_v34 = vadd.f32 %v686_v14, %v1649_v25 }
 0x372   :  { %v691_v20 = vadd.f32 %v674_v13, %v1639_v49 }
 0x374   :  { %v1223_v21 = vmul.f32 -1.442695, %v691_v20 }
 0x375   :  { %v660_v32 = vpop.f32.mrf.mxu3 }
 0x376   :  { %1345 = vpow2.f32 %v1223_v21  ;;  %v661_v33 = vadd.f32 %v660_v32, %v1641_v50 }
 0x377   :  { %v675_v44 = vpop.f32.mrf.mxu0 }
 0x378   :  { %v690_v45 = vadd.f32 %v661_v33, %v1644_v55  ;;  %v688_v58 = vpop.f32.mrf.mxu1 }
 0x37a   :  { %v1222_v59 = vmul.f32 -1.442695, %v690_v45 }
 0x37c   :  { %v1346_v4 = vpop.eup %1345  ;;  %1347 = vpow2.f32 %v1222_v59 }
 0x37d   :  { %v699_v5 = vadd.f32 1.0, %v1346_v4  ;;  %v662_v16 = vpop.f32.mrf.mxu3 }
 0x37f   :  { %1349 = vrcp.f32 %v699_v5  ;;  %v726_v39 = vand.u32 2147483648, %v699_v5  ;;  %vm720_vm6 = vweird.f32 %v699_v5  ;;  %v724_v43 = vand.u32 2147483647, %v699_v5 }
 0x381   :  { %v727_v56 = vor.u32 1.1754944e-38, %v726_v39  ;;  %vm725_vm8 = vcmp.eq.f32.partialorder %v724_v43, 8.507059e+37 }
 0x382   :  { %v1348_v17 = vpop.eup %1347 }
 0x383   :  { %v698_v26 = vadd.f32 1.0, %v1348_v17 }
 0x385   :  { %1351 = vrcp.f32 %v698_v26  ;;  %v1350_v54 = vpop.eup %1349  ;;  %v711_v23 = vand.u32 2147483648, %v698_v26  ;;  %v709_v8 = vand.u32 2147483647, %v698_v26  ;;  %vm705_vm2 = vweird.f32 %v698_v26 }
 0x386   :  { %v716_v10 = vmul.f32 %v1350_v54, %v699_v5  ;;  %vm721_vm5 = vweird.f32 %v1350_v54 }
 0x387   :  { %v712_v3 = vor.u32 1.1754944e-38, %v711_v23  ;;  %vm710_vm4 = vcmp.eq.f32.partialorder %v709_v8, 8.507059e+37  ;;  %vm722_vm7 = vmor %vm720_vm6, %vm721_vm5 }
 0x388   :  { %v717_v18 = vsub.f32 1.0, %v716_v10 }
 0x38a   :  { %v718_v28 = vmul.f32 %v1350_v54, %v717_v18 }
 0x38b   :  { %v1352_v12 = vpop.eup %1351 }
 0x38c   :  { %v701_v15 = vmul.f32 %v1352_v12, %v698_v26  ;;  %vm706_vm1 = vweird.f32 %v1352_v12  ;;  %v719_v38 = vadd.f32 %v1350_v54, %v718_v28 }
 0x38d   :  { %vm707_vm3 = vmor %vm705_vm2, %vm706_vm1 }
 0x38e   :  { %v702_v19 = vsub.f32 1.0, %v701_v15  ;;  %v723_v42 = vsel %vm722_vm7, %v1350_v54, %v719_v38 }
 0x38f   :  { %v728_v29 = vsel %vm725_vm8, %v727_v56, %v723_v42 }
 0x390   :  { %v703_v24 = vmul.f32 %v1352_v12, %v702_v19  ;;  %v733_v57 = vsub.f32 1.0, %v728_v29  ;;  %v735_v61 = vmul.f32 %v728_v29, %v1763_v6 }
 0x392   :  { %v704_v31 = vadd.f32 %v1352_v12, %v703_v24 }
 0x394   :  { %v708_v36 = vsel %vm707_vm3, %v1352_v12, %v704_v31 }
 0x395   :  { %v713_v37 = vsel %vm710_vm4, %v712_v3, %v708_v36 }
 0x396   :  { %v730_v48 = vmul.f32 %v713_v37, %v687_v34 }
 0x398   :  { %v731_v53 = vadd.f32 %v730_v48, %v1652_v51 }
 0x39a   :  { %1353 = vtanh.f32 %v731_v53 }
 0x3a0   :  { %v1354_v40 = vpop.eup %1353 }
 0x3a1   :  { %v734_v60 = vmul.f32 %v1354_v40, %v733_v57 }
 0x3a3   :  { %v1799_v62 = vadd.f32 %v735_v61, %v734_v60 }
 0x3a5   :  { %737 = vst [vmem:[#allocation2 + $0x4] sm:$0x1] %v1799_v62  ;;  %v738_v63 = vpack.c.bf16 %v1799_v62, %v1799_v62 }
 0x3a7   :  { %747 = vmatmul.bf16.vlgmr.msra.gmra.mxu2 %v738_v63  ;;  %760 = vmatmul.bf16.vlgmr.msra.gmra.mxu3 %v738_v63 }
 0x3a8   :  { %773 = vmatmul.bf16.vlgmr.msrb.gmra.mxu0 %v738_v63  ;;  %941 = vmatpush.bf16.msra.mxu2 %v1498_v41 }
 0x3ac   :  { %942 = vmatpush.bf16.msra.mxu2 %v1513_v52 }
 0x3b0   :  { %943 = vmatpush.bf16.msra.mxu2 %v1530_v1 }
 0x3b4   :  { %944 = vmatpush.bf16.msra.mxu2 %v1539_v11 }
 0x3b8   :  { %945 = vmatpush.bf16.msra.mxu2 %v1551_v22 }
 0x3bc   :  { %946 = vmatpush.bf16.msra.mxu2 %v1560_v27 }
 0x3c0   :  { %947 = vmatpush.bf16.msra.mxu2 %v1567_v30 }
 0x3c4   :  { %948 = vmatpush.bf16.msra.mxu2 %v1573_v35 }
 0x425   :  { %v774_v0 = vpop.f32.mrf.mxu0 }
 0x426   :  { %v775_v26 = vadd.f32 %v774_v0, %v1649_v25 }
 0x42a   :  { %v748_v2 = vpop.f32.mrf.mxu2  ;;  %v761_v46 = vpop.f32.mrf.mxu3 }
 0x42b   :  { %v749_v6 = vadd.f32 %v748_v2, %v1641_v50  ;;  %v762_v41 = vadd.f32 %v761_v46, %v1637_v47 }
 0x42d   :  { %v778_v52 = vadd.f32 %v749_v6, %v1644_v55  ;;  %v779_v1 = vadd.f32 %v762_v41, %v1639_v49  ;;  %v776_v11 = vpop.f32.mrf.mxu0 }
 0x42f   :  { %v1224_v9 = vmul.f32 -1.442695, %v778_v52  ;;  %v1225_v22 = vmul.f32 -1.442695, %v779_v1 }
 0x431   :  { %1355 = vpow2.f32 %v1224_v9 }
 0x432   :  { %1357 = vpow2.f32 %v1225_v22  ;;  %v750_v27 = vpop.f32.mrf.mxu2  ;;  %v763_v30 = vpop.f32.mrf.mxu3 }
 0x437   :  { %v1356_v7 = vpop.eup %1355 }
 0x438   :  { %v1358_v35 = vpop.eup %1357  ;;  %v786_v13 = vadd.f32 1.0, %v1356_v7 }
 0x439   :  { %v787_v14 = vadd.f32 1.0, %v1358_v35 }
 0x43a   :  { %1359 = vrcp.f32 %v786_v13  ;;  %v799_v45 = vand.u32 2147483648, %v786_v13  ;;  %v797_v4 = vand.u32 2147483647, %v786_v13  ;;  %vm793_vm10 = vweird.f32 %v786_v13 }
 0x43b   :  { %1361 = vrcp.f32 %v787_v14  ;;  %v814_v18 = vand.u32 2147483648, %v787_v14  ;;  %vm808_vm14 = vweird.f32 %v787_v14  ;;  %v812_v19 = vand.u32 2147483647, %v787_v14 }
 0x43c   :  { %v800_v17 = vor.u32 1.1754944e-38, %v799_v45  ;;  %vm798_vm12 = vcmp.eq.f32.partialorder %v797_v4, 8.507059e+37 }
 0x43d   :  { %v815_v8 = vor.u32 1.1754944e-38, %v814_v18  ;;  %vm813_vm0 = vcmp.eq.f32.partialorder %v812_v19, 8.507059e+37  ;;  %v1298_v18 = vld [vmem:[%s1871_s4 + $0x30] sm:$0xff] }
 0x440   :  { %v1360_v20 = vpop.eup %1359 }
 0x441   :  { %v1362_v21 = vpop.eup %1361  ;;  %v789_v32 = vmul.f32 %v1360_v20, %v786_v13  ;;  %vm794_vm9 = vweird.f32 %v1360_v20 }
 0x442   :  { %v804_v33 = vmul.f32 %v1362_v21, %v787_v14  ;;  %vm795_vm11 = vmor %vm793_vm10, %vm794_vm9  ;;  %vm809_vm13 = vweird.f32 %v1362_v21 }
 0x443   :  { %v790_v44 = vsub.f32 1.0, %v789_v32  ;;  %vm810_vm15 = vmor %vm808_vm14, %vm809_vm13 }
 0x444   :  { %v805_v58 = vsub.f32 1.0, %v804_v33 }
 0x445   :  { %v791_v59 = vmul.f32 %v1360_v20, %v790_v44 }
 0x446   :  { %v806_v5 = vmul.f32 %v1362_v21, %v805_v58 }
 0x447   :  { %v792_v16 = vadd.f32 %v1360_v20, %v791_v59 }
 0x448   :  { %v807_v12 = vadd.f32 %v1362_v21, %v806_v5 }
 0x449   :  { %v796_v54 = vsel %vm795_vm11, %v1360_v20, %v792_v16 }
 0x44a   :  { %v801_v10 = vsel %vm798_vm12, %v800_v17, %v796_v54  ;;  %v811_v24 = vsel %vm810_vm15, %v1362_v21, %v807_v12 }
 0x44b   :  { %v818_v15 = vmul.f32 %v801_v10, %v775_v26  ;;  %v816_v28 = vsel %vm813_vm0, %v815_v8, %v811_v24 }
 0x44c   :  { %v821_v31 = vsub.f32 1.0, %v816_v28  ;;  %v823_v36 = vmul.f32 %v816_v28, %v1799_v62  ;;  %v1297_v28 = vld [vmem:[%s1871_s4 + $0x28] sm:$0xff] }
 0x44d   :  { %v819_v23 = vadd.f32 %v818_v15, %v1652_v51  ;;  %v1299_v15 = vld [vmem:[%s1871_s4 + $0x38] sm:$0xff] }
 0x44e   :  { %1070 = vmatpush.bf16.msra.mxu3 %v1299_v15 }
 0x44f   :  { %1363 = vtanh.f32 %v819_v23 }
 0x452   :  { %1071 = vmatpush.bf16.msra.mxu3 %v1298_v18 }
 0x455   :  { %v1364_v3 = vpop.eup %1363 }
 0x456   :  { %v822_v34 = vmul.f32 %v1364_v3, %v821_v31  ;;  %1072 = vmatpush.bf16.msra.mxu3 %v1297_v28 }
 0x458   :  { %v824_v37 = vadd.f32 %v823_v36, %v822_v34 }
 0x45a   :  { %825 = vst [vmem:[#allocation2 + $0x5] sm:$0x1] %v824_v37  ;;  %v826_v38 = vpack.c.bf16 %v824_v37, %v824_v37 }
 0x45c   :  { %835 = vmatmul.bf16.vlgmr.msrb.gmra.mxu1 %v826_v38  ;;  %848 = vmatmul.bf16.vlgmr.msrb.gmra.mxu2 %v826_v38 }
 0x45d   :  { %861 = vmatmul.bf16.vlgmr.msrb.gmra.mxu3 %v826_v38 }
 0x4d9   :  { %v836_v39 = vpop.f32.mrf.mxu1 }
 0x4da   :  { %v837_v48 = vadd.f32 %v836_v39, %v1641_v50  ;;  %v1295_v39 = vld [vmem:[%s1871_s4 + $0x18] sm:$0xff] }
 0x4dc   :  { %v866_v43 = vadd.f32 %v837_v48, %v1644_v55 }
 0x4de   :  { %v1226_v53 = vmul.f32 -1.442695, %v866_v43  ;;  %v1294_v43 = vld [vmem:[%s1871_s4 + $0x10] sm:$0xff] }
 0x4df   :  { %v849_v42 = vpop.f32.mrf.mxu2 }
 0x4e0   :  { %1365 = vpow2.f32 %v1226_v53  ;;  %v850_v56 = vadd.f32 %v849_v42, %v1637_v47  ;;  %v862_v29 = vpop.f32.mrf.mxu3 }
 0x4e1   :  { %v838_v57 = vpop.f32.mrf.mxu1  ;;  %v863_v13 = vadd.f32 %v862_v29, %v1649_v25  ;;  %v1292_v29 = vld [vmem:[%s1871_s4] sm:$0xff] }
 0x4e2   :  { %v867_v40 = vadd.f32 %v850_v56, %v1639_v49  ;;  %v1293_v56 = vld [vmem:[%s1871_s4 + $0x8] sm:$0xff] }
 0x4e4   :  { %v1227_v60 = vmul.f32 -1.442695, %v867_v40 }
 0x4e6   :  { %v1366_v61 = vpop.eup %1365  ;;  %1367 = vpow2.f32 %v1227_v60 }
 0x4e7   :  { %v874_v62 = vadd.f32 1.0, %v1366_v61  ;;  %v851_v63 = vpop.f32.mrf.mxu2 }
 0x4e8   :  { %v864_v0 = vpop.f32.mrf.mxu3 }
 0x4e9   :  { %1369 = vrcp.f32 %v874_v62  ;;  %v887_v1 = vand.u32 2147483648, %v874_v62  ;;  %v885_v9 = vand.u32 2147483647, %v874_v62  ;;  %vm881_vm2 = vweird.f32 %v874_v62 }
 0x4eb   :  { %v888_v7 = vor.u32 1.1754944e-38, %v887_v1  ;;  %vm886_vm4 = vcmp.eq.f32.partialorder %v885_v9, 8.507059e+37 }
 0x4ec   :  { %v1368_v2 = vpop.eup %1367 }
 0x4ed   :  { %v875_v46 = vadd.f32 1.0, %v1368_v2 }
 0x4ef   :  { %v1370_v6 = vpop.eup %1369  ;;  %1371 = vrcp.f32 %v875_v46  ;;  %v902_v32 = vand.u32 2147483648, %v875_v46  ;;  %v900_v44 = vand.u32 2147483647, %v875_v46  ;;  %vm896_vm6 = vweird.f32 %v875_v46 }
 0x4f0   :  { %v877_v41 = vmul.f32 %v1370_v6, %v874_v62  ;;  %vm882_vm1 = vweird.f32 %v1370_v6 }
 0x4f1   :  { %vm883_vm3 = vmor %vm881_vm2, %vm882_vm1  ;;  %v903_v59 = vor.u32 1.1754944e-38, %v902_v32  ;;  %vm901_vm8 = vcmp.eq.f32.partialorder %v900_v44, 8.507059e+37  ;;  %vm1083_vm1 = vcmask 7168  }
 0x4f2   :  { %v878_v52 = vsub.f32 1.0, %v877_v41 }
 0x4f4   :  { %v879_v11 = vmul.f32 %v1370_v6, %v878_v52 }
 0x4f5   :  { %v1372_v22 = vpop.eup %1371 }
 0x4f6   :  { %v892_v27 = vmul.f32 %v1372_v22, %v875_v46  ;;  %v880_v30 = vadd.f32 %v1370_v6, %v879_v11  ;;  %vm897_vm5 = vweird.f32 %v1372_v22 }
 0x4f7   :  { %vm898_vm7 = vmor %vm896_vm6, %vm897_vm5 }
 0x4f8   :  { %v893_v35 = vsub.f32 1.0, %v892_v27  ;;  %v884_v14 = vsel %vm883_vm3, %v1370_v6, %v880_v30 }
 0x4f9   :  { %v889_v20 = vsel %vm886_vm4, %v888_v7, %v884_v14 }
 0x4fa   :  { %v894_v21 = vmul.f32 %v1372_v22, %v893_v35  ;;  %v906_v33 = vmul.f32 %v889_v20, %v863_v13 }
 0x4fc   :  { %v895_v45 = vadd.f32 %v1372_v22, %v894_v21  ;;  %v907_v58 = vadd.f32 %v906_v33, %v1652_v51 }
 0x4fe   :  { %v899_v4 = vsel %vm898_vm7, %v1372_v22, %v895_v45  ;;  %1373 = vtanh.f32 %v907_v58 }
 0x4ff   :  { %v904_v5 = vsel %vm901_vm8, %v903_v59, %v899_v4  ;;  %v1304_v59 = vld [vmem:[%s1870_s3 + $0x2] ss:$0 sm:$0xff] }
 0x500   :  { %v909_v16 = vsub.f32 1.0, %v904_v5  ;;  %v911_v54 = vmul.f32 %v904_v5, %v824_v37  ;;  %v1296_v37 = vld [vmem:[%s1871_s4 + $0x20] sm:$0xff] }
 0x501   :  { %1073 = vmatpush.bf16.msra.mxu3 %v1296_v37 }
 0x504   :  { %v1374_v17 = vpop.eup %1373 }
 0x505   :  { %v910_v26 = vmul.f32 %v1374_v17, %v909_v16  ;;  %1074 = vmatpush.bf16.msra.mxu3 %v1295_v39 }
 0x507   :  { %v1825_v10 = vadd.f32 %v911_v54, %v910_v26 }
 0x509   :  { %913 = vst [vmem:[#allocation2 + $0x6] sm:$0x1] %v1825_v10  ;;  %v914_v12 = vpack.c.bf16 %v1825_v10, %v1825_v10  ;;  %1075 = vmatpush.bf16.msra.mxu3 %v1294_v43 }
 0x50b   :  { %923 = vmatmul.bf16.vlgmr.msra.gmra.mxu0 %v914_v12  ;;  %936 = vmatmul.bf16.vlgmr.msra.gmra.mxu1 %v914_v12 }
 0x50c   :  { %949 = vmatmul.bf16.vlgmr.msra.gmra.mxu2 %v914_v12 }
 0x50d   :  { %1076 = vmatpush.bf16.msra.mxu3 %v1293_v56 }
 0x511   :  { %1077 = vmatpush.bf16.msra.mxu3 %v1292_v29 }
 0x588   :  { %v924_v19 = vpop.f32.mrf.mxu0  ;;  %v937_v23 = vpop.f32.mrf.mxu1 }
 0x589   :  { %v925_v24 = vadd.f32 %v924_v19, %v1641_v50  ;;  %v938_v8 = vadd.f32 %v937_v23, %v1637_v47 }
 0x58b   :  { %v954_v31 = vadd.f32 %v925_v24, %v1644_v55  ;;  %v955_v3 = vadd.f32 %v938_v8, %v1639_v49 }
 0x58d   :  { %v1228_v34 = vmul.f32 -1.442695, %v954_v31  ;;  %v1229_v36 = vmul.f32 -1.442695, %v955_v3 }
 0x58f   :  { %1375 = vpow2.f32 %v1228_v34  ;;  %v950_v38 = vpop.f32.mrf.mxu2 }
 0x590   :  { %1377 = vpow2.f32 %v1229_v36  ;;  %v926_v50 = vpop.f32.mrf.mxu0  ;;  %v939_v47 = vpop.f32.mrf.mxu1  ;;  %v951_v1 = vadd.f32 %v950_v38, %v1649_v25 }
 0x595   :  { %v1376_v55 = vpop.eup %1375 }
 0x596   :  { %v1378_v49 = vpop.eup %1377  ;;  %v962_v48 = vadd.f32 1.0, %v1376_v55 }
 0x597   :  { %v963_v53 = vadd.f32 1.0, %v1378_v49  ;;  %v952_v42 = vpop.f32.mrf.mxu2 }
 0x598   :  { %1379 = vrcp.f32 %v962_v48  ;;  %v975_v0 = vand.u32 2147483648, %v962_v48  ;;  %v973_v46 = vand.u32 2147483647, %v962_v48  ;;  %vm969_vm10 = vweird.f32 %v962_v48 }
 0x599   :  { %1381 = vrcp.f32 %v963_v53  ;;  %v990_v27 = vand.u32 2147483648, %v963_v53  ;;  %vm984_vm14 = vweird.f32 %v963_v53  ;;  %v988_v7 = vand.u32 2147483647, %v963_v53 }
 0x59a   :  { %v976_v52 = vor.u32 1.1754944e-38, %v975_v0  ;;  %vm974_vm12 = vcmp.eq.f32.partialorder %v973_v46, 8.507059e+37 }
 0x59b   :  { %v991_v14 = vor.u32 1.1754944e-38, %v990_v27  ;;  %vm989_vm0 = vcmp.eq.f32.partialorder %v988_v7, 8.507059e+37 }
 0x59e   :  { %v1380_v57 = vpop.eup %1379 }
 0x59f   :  { %v1382_v40 = vpop.eup %1381  ;;  %v965_v60 = vmul.f32 %v1380_v57, %v962_v48  ;;  %vm970_vm9 = vweird.f32 %v1380_v57 }
 0x5a0   :  { %v980_v61 = vmul.f32 %v1382_v40, %v963_v53  ;;  %vm971_vm11 = vmor %vm969_vm10, %vm970_vm9  ;;  %vm985_vm13 = vweird.f32 %v1382_v40 }
 0x5a1   :  { %v966_v62 = vsub.f32 1.0, %v965_v60  ;;  %vm986_vm15 = vmor %vm984_vm14, %vm985_vm13 }
 0x5a2   :  { %v981_v63 = vsub.f32 1.0, %v980_v61 }
 0x5a3   :  { %v967_v2 = vmul.f32 %v1380_v57, %v966_v62 }
 0x5a4   :  { %v982_v6 = vmul.f32 %v1382_v40, %v981_v63 }
 0x5a5   :  { %v968_v41 = vadd.f32 %v1380_v57, %v967_v2 }
 0x5a6   :  { %v983_v22 = vadd.f32 %v1382_v40, %v982_v6 }
 0x5a7   :  { %v972_v11 = vsel %vm971_vm11, %v1380_v57, %v968_v41 }
 0x5a8   :  { %v977_v9 = vsel %vm974_vm12, %v976_v52, %v972_v11  ;;  %v987_v13 = vsel %vm986_vm15, %v1382_v40, %v983_v22 }
 0x5a9   :  { %v994_v30 = vmul.f32 %v977_v9, %v951_v1  ;;  %v992_v20 = vsel %vm989_vm0, %v991_v14, %v987_v13 }
 0x5aa   :  { %v997_v21 = vsub.f32 1.0, %v992_v20  ;;  %v999_v33 = vmul.f32 %v992_v20, %v1825_v10 }
 0x5ab   :  { %v995_v35 = vadd.f32 %v994_v30, %v1652_v51 }
 0x5ad   :  { %1383 = vtanh.f32 %v995_v35 }
 0x5b3   :  { %v1384_v32 = vpop.eup %1383 }
 0x5b4   :  { %v998_v25 = vmul.f32 %v1384_v32, %v997_v21 }
 0x5b6   :  { %v1000_v44 = vadd.f32 %v999_v33, %v998_v25 }
 0x5b8   :  { %1001 = vst [vmem:[#allocation2 + $0x7] sm:$0x1] %v1000_v44 }
 0x5bf   :  { %v1002_v45 = vld [vmem:[#allocation2] sm:$0xff] }
 0x5c0   :  { %v1004_v58 = vpack.c.bf16 %v1002_v45, %v1002_v45 }
 0x5c2   :  { %1078 = vmatmul.bf16.vlgmr.msra.gmra.mxu3 %v1004_v58 }
 0x645   :  { %v1079_v51 = vpop.f32.mrf.mxu3 }
 0x646   :  { %v1080_v4 = vadd.f32 %v1304_v59, %v1079_v51 }
 0x648   :  { %1084 = vst.msk [vmem:[%s1872_s5] sm:$0xff] %vm1083_vm1, %v1080_v4 }
 0x64d   :  { %v1081_v5 = vpop.f32.mrf.mxu3 }
 0x64e   :  { %1089 = vsyncpa [#allocation4], 1 }

</bundles_post_ra>
